<compile_context>
chip_gen: v5e
topology: v5e:2x2
jax: 0.10.0
libtpu: 0.0.40
codegen_flags: <defaults>
</compile_context>

<pallas_src>
import jax
import jax.numpy as jnp
from jax.experimental import pallas as pl
from jax.experimental.pallas import tpu as pltpu

IN_FEATURES = 28 * 28      # 784: full K dim of layer 1 (784 % 8 == 0, no pad needed)
HIDDEN = 512
OUT_FEATURES = 10
OUT_PADDED = 128           # lane-dense output stores (multiple of 128)
MAX_TILE = 1024            # batch-tile cap; worst-case working set ~<20 MiB
VMEM_LIMIT_BYTES = 40 * 1024 * 1024   # safe on v5e/v6e (128 MiB) and v7x (64 MiB)


def _round_up(x, m):
    return (x + m - 1) // m * m


def mlp_kernel(x_ref, w1_ref, b1_ref, w2_ref, b2_ref, w3_ref, b3_ref, out_ref):
    # x tile: (TB, 784) f32.  Weights/biases are the same block every grid step,
    # so they stay resident in VMEM while the x / out tiles are pipelined.
    x = x_ref[...].astype(jnp.bfloat16)               # VPU cast, hidden under MXU
    h1 = jnp.dot(x, w1_ref[...], preferred_element_type=jnp.float32) + b1_ref[...]
    h1 = jnp.maximum(h1, 0.0).astype(jnp.bfloat16)    # ReLU in f32, bf16 into next MXU
    h2 = jnp.dot(h1, w2_ref[...], preferred_element_type=jnp.float32) + b2_ref[...]
    h2 = jnp.maximum(h2, 0.0).astype(jnp.bfloat16)
    logits = jnp.dot(h2, w3_ref[...], preferred_element_type=jnp.float32) + b3_ref[...]
    out_ref[...] = logits.astype(out_ref.dtype)       # (TB, 128) lane-dense store


def _resident_spec(shape):
    """BlockSpec for a VMEM-resident operand (constant index_map -> DMA'd once).

    Buffered(1) drops the default second pipeline buffer (useless for a constant
    block index) -> VMEM headroom on v7x.  Fall back silently if unsupported.
    """
    idx = lambda i: (0, 0)
    if hasattr(pl, "Buffered"):
        try:
            return pl.BlockSpec(shape, idx, pipeline_mode=pl.Buffered(1))
        except TypeError:
            pass
    return pl.BlockSpec(shape, idx)


def _batch_tiling(B, max_tile=MAX_TILE):
    """Choose (batch_tile, padded_batch).

    * B <= max_tile: no padding (a full-extent block is always legal); if B is big
      enough and 16-divisible, split into 2 steps so v7x megacore gets both cores.
    * B  > max_tile: near-even tiles (multiple of 8) to minimize tail padding.
    """
    if B <= max_tile:
        if B >= 512 and B % 16 == 0:
            return B // 2, B           # two grid steps -> both TensorCores on v7x
        return B, B                    # single step, zero padding, zero copies
    n_steps = pl.cdiv(B, max_tile)
    tb = _round_up(pl.cdiv(B, n_steps), 8)
    return tb, tb * n_steps


def prepare_kernel_params(params):
    """One-time conversion of torch-layout params to kernel layout.

    (out, in) f32 -> (in, out) bf16; layer-3 N padded 10->128 with zeros
    (numerically exact).  Biases stay f32 as (1, N) rows.  Call once outside the
    forward path (no per-call transposes).
    """
    w1, b1, w2, b2, w3, b3 = params
    w1_t = w1.T.astype(jnp.bfloat16)                        # (784, 512)
    w2_t = w2.T.astype(jnp.bfloat16)                        # (512, 512)
    w3_t = jnp.zeros((HIDDEN, OUT_PADDED), jnp.bfloat16)
    w3_t = w3_t.at[:, :OUT_FEATURES].set(w3.T.astype(jnp.bfloat16))
    b1_r = b1.reshape(1, HIDDEN).astype(jnp.float32)
    b2_r = b2.reshape(1, HIDDEN).astype(jnp.float32)
    b3_r = jnp.zeros((1, OUT_PADDED), jnp.float32)
    b3_r = b3_r.at[0, :OUT_FEATURES].set(b3.astype(jnp.float32))
    return (w1_t, b1_r, w2_t, b2_r, w3_t, b3_r)


def neural_network_forward(x_img, kernel_params, max_tile=MAX_TILE):
    """x_img: (B, 1, 28, 28) float32.  Returns logits (B, 10) float32."""
    w1_t, b1_r, w2_t, b2_r, w3_t, b3_r = kernel_params
    B = x_img.shape[0]

    # nn.Flatten(): flatten all dims after batch (row-major, same as torch).
    # Contiguous reshape -> no copy; x stays f32 (bf16 cast happens in-kernel).
    x_flat = x_img.reshape(B, -1).astype(jnp.float32)       # (B, 784)

    tb, b_pad = _batch_tiling(B, max_tile)
    if b_pad != B:
        x_flat = jnp.pad(x_flat, ((0, b_pad - B), (0, 0)))  # tail pad only when needed

    grid = (b_pad // tb,)
    flops = 2 * b_pad * (IN_FEATURES * HIDDEN + HIDDEN * HIDDEN + HIDDEN * OUT_PADDED)
    bytes_accessed = (
        b_pad * IN_FEATURES * 4 + b_pad * OUT_PADDED * 4
        + (w1_t.size + w2_t.size + w3_t.size) * 2
        + (b1_r.size + b2_r.size + b3_r.size) * 4
    )

    out = pl.pallas_call(
        mlp_kernel,
        out_shape=jax.ShapeDtypeStruct((b_pad, OUT_PADDED), jnp.float32),
        grid=grid,
        in_specs=[
            pl.BlockSpec((tb, IN_FEATURES), lambda i: (i, 0)),   # x: tiled over batch
            _resident_spec((IN_FEATURES, HIDDEN)),               # weights / biases:
            _resident_spec((1, HIDDEN)),                         #   VMEM-resident,
            _resident_spec((HIDDEN, HIDDEN)),                    #   DMA'd once
            _resident_spec((1, HIDDEN)),
            _resident_spec((HIDDEN, OUT_PADDED)),
            _resident_spec((1, OUT_PADDED)),
        ],
        out_specs=pl.BlockSpec((tb, OUT_PADDED), lambda i: (i, 0)),
        compiler_params=pltpu.CompilerParams(
            dimension_semantics=("parallel",),
            vmem_limit_bytes=VMEM_LIMIT_BYTES,
        ),
        cost_estimate=pl.CostEstimate(
            flops=flops, transcendentals=0, bytes_accessed=bytes_accessed),
    )(x_flat, w1_t, b1_r, w2_t, b2_r, w3_t, b3_r)

    return out[:B, :OUT_FEATURES]


def init_params(key):
    """Deterministic init mimicking nn.Linear's default (uniform +/- 1/sqrt(fan_in))."""
    shapes = [
        ((512, 784), (512,)),   # linear1: weight (out, in), bias (out,)
        ((512, 512), (512,)),   # linear2
        ((10, 512), (10,)),     # linear3
    ]
    params = []
    for (w_shape, b_shape) in shapes:
        key, kw, kb = jax.random.split(key, 3)
        bound = 1.0 / jnp.sqrt(jnp.float32(w_shape[1]))
        w = jax.random.uniform(kw, w_shape, jnp.float32, -bound, bound)
        b = jax.random.uniform(kb, b_shape, jnp.float32, -bound, bound)
        params.extend([w, b])
    return tuple(params)


def reference_forward(x_img, params):
    """Pure-JAX f32 reference of the PyTorch module."""
    w1, b1, w2, b2, w3, b3 = params
    x = x_img.reshape(x_img.shape[0], -1)
    h1 = jnp.maximum(x @ w1.T + b1, 0.0)
    h2 = jnp.maximum(h1 @ w2.T + b2, 0.0)
    return h2 @ w3.T + b3


if __name__ == "__main__":
    key = jax.random.PRNGKey(0)
    key, kx = jax.random.split(key)
    params = init_params(key)
    kernel_params = prepare_kernel_params(params)   # one-time layout conversion

    B = 2
    x = jax.random.normal(kx, (B, 1, 28, 28), jnp.float32)   # MNIST-like NCHW input

    logits = neural_network_forward(x, kernel_params)
    logits = jax.block_until_ready(logits)

    ref = reference_forward(x, params)
    assert logits.shape == (B, 10)
    # bf16 matmul operands with f32 accumulation: tolerance loosened accordingly.
    assert jnp.allclose(logits, ref, atol=3e-2, rtol=3e-2)
    print("KERNEL_OK")
</pallas_src>

<mosaic_0001>
module attributes {stable_mosaic.version = 11 : i64} {
  func.func @mlp_kernel(%arg0: i32, %arg1: memref<2x784xf32, #tpu.memory_space<vmem>>, %arg2: memref<784x512xbf16, #tpu.memory_space<vmem>>, %arg3: memref<1x512xf32, #tpu.memory_space<vmem>>, %arg4: memref<512x512xbf16, #tpu.memory_space<vmem>>, %arg5: memref<1x512xf32, #tpu.memory_space<vmem>>, %arg6: memref<512x128xbf16, #tpu.memory_space<vmem>>, %arg7: memref<1x128xf32, #tpu.memory_space<vmem>>, %arg8: memref<2x128xf32, #tpu.memory_space<vmem>>) attributes {dimension_semantics = [#tpu.dimension_semantics<parallel>], iteration_bounds = array<i64: 1>, scalar_prefetch = 0 : i64, scratch_operands = 0 : i64, tpu.core_type = #tpu.core_type<tc>, window_params = [{transform_indices = @transform_0, window_bounds = array<i64: 2, 784>}, {pipeline_mode = #tpu.pipeline_mode<synchronous>, transform_indices = @transform_1, window_bounds = array<i64: 784, 512>}, {pipeline_mode = #tpu.pipeline_mode<synchronous>, transform_indices = @transform_2, window_bounds = array<i64: 1, 512>}, {pipeline_mode = #tpu.pipeline_mode<synchronous>, transform_indices = @transform_3, window_bounds = array<i64: 512, 512>}, {pipeline_mode = #tpu.pipeline_mode<synchronous>, transform_indices = @transform_4, window_bounds = array<i64: 1, 512>}, {pipeline_mode = #tpu.pipeline_mode<synchronous>, transform_indices = @transform_5, window_bounds = array<i64: 512, 128>}, {pipeline_mode = #tpu.pipeline_mode<synchronous>, transform_indices = @transform_6, window_bounds = array<i64: 1, 128>}, {transform_indices = @transform_7, window_bounds = array<i64: 2, 128>}]} {
    %c0 = arith.constant 0 : index
    %c0_0 = arith.constant 0 : index
    %0 = vector.load %arg1[%c0, %c0_0] : memref<2x784xf32, #tpu.memory_space<vmem>>, vector<2x784xf32>
    %1 = arith.truncf %0 : vector<2x784xf32> to vector<2x784xbf16>
    %c0_1 = arith.constant 0 : index
    %c0_2 = arith.constant 0 : index
    %2 = vector.load %arg2[%c0_1, %c0_2] : memref<784x512xbf16, #tpu.memory_space<vmem>>, vector<784x512xbf16>
    %cst = arith.constant dense<0.000000e+00> : vector<2x512xf32>
    %3 = tpu.matmul %1, %2, %cst {dimension_numbers = #tpu.dot_dimension_numbers<[1], [0], [0], [1], [0, 0, 1, 1], [], []>} : vector<2x784xbf16>, vector<784x512xbf16>, vector<2x512xf32> -> vector<2x512xf32>
    %c0_3 = arith.constant 0 : index
    %c0_4 = arith.constant 0 : index
    %4 = vector.load %arg3[%c0_3, %c0_4] : memref<1x512xf32, #tpu.memory_space<vmem>>, vector<1x512xf32>
    %5 = vector.broadcast %4 : vector<1x512xf32> to vector<2x512xf32>
    %6 = arith.addf %3, %5 : vector<2x512xf32>
    %cst_5 = arith.constant 0.000000e+00 : f32
    %7 = vector.broadcast %cst_5 : f32 to vector<2x512xf32>
    %8 = arith.maximumf %6, %7 : vector<2x512xf32>
    %9 = arith.truncf %8 : vector<2x512xf32> to vector<2x512xbf16>
    %c0_6 = arith.constant 0 : index
    %c0_7 = arith.constant 0 : index
    %10 = vector.load %arg4[%c0_6, %c0_7] : memref<512x512xbf16, #tpu.memory_space<vmem>>, vector<512x512xbf16>
    %cst_8 = arith.constant dense<0.000000e+00> : vector<2x512xf32>
    %11 = tpu.matmul %9, %10, %cst_8 {dimension_numbers = #tpu.dot_dimension_numbers<[1], [0], [0], [1], [0, 0, 1, 1], [], []>} : vector<2x512xbf16>, vector<512x512xbf16>, vector<2x512xf32> -> vector<2x512xf32>
    %c0_9 = arith.constant 0 : index
    %c0_10 = arith.constant 0 : index
    %12 = vector.load %arg5[%c0_9, %c0_10] : memref<1x512xf32, #tpu.memory_space<vmem>>, vector<1x512xf32>
    %13 = vector.broadcast %12 : vector<1x512xf32> to vector<2x512xf32>
    %14 = arith.addf %11, %13 : vector<2x512xf32>
    %cst_11 = arith.constant 0.000000e+00 : f32
    %15 = vector.broadcast %cst_11 : f32 to vector<2x512xf32>
    %16 = arith.maximumf %14, %15 : vector<2x512xf32>
    %17 = arith.truncf %16 : vector<2x512xf32> to vector<2x512xbf16>
    %c0_12 = arith.constant 0 : index
    %c0_13 = arith.constant 0 : index
    %18 = vector.load %arg6[%c0_12, %c0_13] : memref<512x128xbf16, #tpu.memory_space<vmem>>, vector<512x128xbf16>
    %cst_14 = arith.constant dense<0.000000e+00> : vector<2x128xf32>
    %19 = tpu.matmul %17, %18, %cst_14 {dimension_numbers = #tpu.dot_dimension_numbers<[1], [0], [0], [1], [0, 0, 1, 1], [], []>} : vector<2x512xbf16>, vector<512x128xbf16>, vector<2x128xf32> -> vector<2x128xf32>
    %c0_15 = arith.constant 0 : index
    %c0_16 = arith.constant 0 : index
    %20 = vector.load %arg7[%c0_15, %c0_16] : memref<1x128xf32, #tpu.memory_space<vmem>>, vector<1x128xf32>
    %21 = vector.broadcast %20 : vector<1x128xf32> to vector<2x128xf32>
    %22 = arith.addf %19, %21 : vector<2x128xf32>
    %c0_17 = arith.constant 0 : index
    %c0_18 = arith.constant 0 : index
    %23 = vector.load %arg8[%c0_17, %c0_18] : memref<2x128xf32, #tpu.memory_space<vmem>>, vector<2x128xf32>
    tpu.vector_store %arg8[%c0_17, %c0_18], %22 {strides = array<i32>} : memref<2x128xf32, #tpu.memory_space<vmem>>, vector<2x128xf32>,
    return
  }
  func.func @transform_0(%arg0: i32) -> (i32, i32) {
    %c0_i32 = arith.constant 0 : i32
    %c0_i32_0 = arith.constant 0 : i32
    return %arg0, %c0_i32 : i32, i32
  }
  func.func @transform_1(%arg0: i32) -> (i32, i32) {
    %c0_i32 = arith.constant 0 : i32
    %c0_i32_0 = arith.constant 0 : i32
    %c0_i32_1 = arith.constant 0 : i32
    return %c0_i32, %c0_i32_0 : i32, i32
  }
  func.func @transform_2(%arg0: i32) -> (i32, i32) {
    %c0_i32 = arith.constant 0 : i32
    %c0_i32_0 = arith.constant 0 : i32
    %c0_i32_1 = arith.constant 0 : i32
    return %c0_i32, %c0_i32_0 : i32, i32
  }
  func.func @transform_3(%arg0: i32) -> (i32, i32) {
    %c0_i32 = arith.constant 0 : i32
    %c0_i32_0 = arith.constant 0 : i32
    %c0_i32_1 = arith.constant 0 : i32
    return %c0_i32, %c0_i32_0 : i32, i32
  }
  func.func @transform_4(%arg0: i32) -> (i32, i32) {
    %c0_i32 = arith.constant 0 : i32
    %c0_i32_0 = arith.constant 0 : i32
    %c0_i32_1 = arith.constant 0 : i32
    return %c0_i32, %c0_i32_0 : i32, i32
  }
  func.func @transform_5(%arg0: i32) -> (i32, i32) {
    %c0_i32 = arith.constant 0 : i32
    %c0_i32_0 = arith.constant 0 : i32
    %c0_i32_1 = arith.constant 0 : i32
    return %c0_i32, %c0_i32_0 : i32, i32
  }
  func.func @transform_6(%arg0: i32) -> (i32, i32) {
    %c0_i32 = arith.constant 0 : i32
    %c0_i32_0 = arith.constant 0 : i32
    %c0_i32_1 = arith.constant 0 : i32
    return %c0_i32, %c0_i32_0 : i32, i32
  }
  func.func @transform_7(%arg0: i32) -> (i32, i32) {
    %c0_i32 = arith.constant 0 : i32
    %c0_i32_0 = arith.constant 0 : i32
    return %arg0, %c0_i32 : i32, i32
  }
}

</mosaic_0001>

<bundles_post_ra>
// kernel: tpu_custom_call.1
= control target key start
LH: loop header
LB: loop body
LE: loop exit
PB: predicated region body
PF: predicated region fallthrough
CT: control target
= control target key end

     0   :  { %12 = vsyncpa [#allocation3], 0  ;;  %s5212_s0 = inlined_call_operand.hbm [shape: f32[2,784], index: 0, kind: input, shape index: {}]   ;;  %s5213_s1 = inlined_call_operand.hbm [shape: bf16[784,512], index: 1, kind: input, shape index: {}]   ;;  %s5214_s2 = inlined_call_operand.hbm [shape: f32[1,512], index: 2, kind: input, shape index: {}]   ;;  %s5215_s3 = inlined_call_operand.hbm [shape: bf16[512,512], index: 3, kind: input, shape index: {}]   ;;  %s5216_s4 = inlined_call_operand.hbm [shape: f32[1,512], index: 4, kind: input, shape index: {}]   ;;  %s5217_s5 = inlined_call_operand.hbm [shape: bf16[512,128], index: 5, kind: input, shape index: {}]   ;;  %s5218_s6 = inlined_call_operand.vmem [shape: f32[1,128], index: 6, kind: input, shape index: {}]   ;;  %s5219_s7 = inlined_call_operand.hbm [shape: f32[2,128], index: 7, kind: output, shape index: {}]  }
   0x1   :  { %13 = vsyncpa [#allocation6], 0 }
   0x2   :  { %14 = vsyncpa [#allocation9], 0 }
   0x3   :  { %15 = vsyncpa [#allocation12], 0  ;;  %s32_s26 = sshll.u32 %s5213_s1, 4  ;;  %s33_s26 = int_to_ptr.hbm [resolvable:$true] %s32_s26 }
   0x4   :  { %16 = vsyncpa [#allocation4], 0  ;;  %s5007_s27 = smov [#allocation5]   ;;  %s56_s8 = sshll.u32 %s5215_s3, 4  ;;  %s57_s8 = int_to_ptr.hbm [resolvable:$true] %s56_s8 }
   0x5   :  { %s34_s28 = sshll.u32 %s5007_s27, 4  ;;  %s5008_s9 = smov 256   ;;  %s35_s28 = int_to_ptr.vmem [resolvable:$true] %s34_s28 }
   0x6   :  { %s5009_s10 = smov 16   ;;  %s5010_s11 = smov [#allocation8]  }
   0x7   :  { %40 = dma.hbm_to_vmem [thread:$0]  %s33_s26, 25088, %s35_s28, [#allocation6], %s5008_s9, %s5008_s9, %s5009_s10  }
   0x8   :  { %s58_s12 = sshll.u32 %s5010_s11, 4  ;;  %s22_s15 = sshll.u32 %s5212_s0, 4  ;;  %s59_s12 = int_to_ptr.vmem [resolvable:$true] %s58_s12  ;;  %s23_s15 = int_to_ptr.hbm [resolvable:$true] %s22_s15 }
   0x9   :  { %64 = dma.hbm_to_vmem [thread:$0]  %s57_s8, 16384, %s59_s12, [#allocation9], %s5008_s9, %s5008_s9, %s5009_s10  }
   0xa   :  { %s46_s17 = sshll.u32 %s5214_s2, 4  ;;  %s5011_s18 = smov [#allocation2]   ;;  %s47_s17 = int_to_ptr.hbm [resolvable:$true] %s46_s17 }
   0xb   :  { %s24_s19 = sshll.u32 %s5011_s18, 4  ;;  %s5012_s3 = smov [#allocation7]   ;;  %s25_s19 = int_to_ptr.vmem [resolvable:$true] %s24_s19 }
   0xc   :  { %27 = dma.hbm_to_vmem [thread:$0]  %s23_s15, 224, %s25_s19, [#allocation3]  }
   0xd   :  { %s48_s20 = sshll.u32 %s5012_s3, 4  ;;  %s70_s23 = sshll.u32 %s5216_s4, 4  ;;  %s49_s20 = int_to_ptr.vmem [resolvable:$true] %s48_s20  ;;  %s71_s23 = int_to_ptr.hbm [resolvable:$true] %s70_s23 }
   0xe   :  { %51 = dma.hbm_to_vmem [thread:$0]  %s47_s17, 64, %s49_s20, [#allocation6]  }
   0xf   :  { %s80_s25 = sshll.u32 %s5217_s5, 4  ;;  %s5013_s26 = smov [#allocation10]   ;;  %s81_s25 = int_to_ptr.hbm [resolvable:$true] %s80_s25 }
  0x10   :  { %s72_s2 = sshll.u32 %s5013_s26, 4  ;;  %s5014_s27 = smov [#allocation11]   ;;  %s73_s2 = int_to_ptr.vmem [resolvable:$true] %s72_s2 }
  0x11   :  { %75 = dma.hbm_to_vmem [thread:$0]  %s71_s23, 64, %s73_s2, [#allocation9]  }
  0x12   :  { %s82_s28 = sshll.u32 %s5014_s27, 4  ;;  %s5015_s29 = smov 64   ;;  %s83_s28 = int_to_ptr.vmem [resolvable:$true] %s82_s28 }
  0x13   :  { %s5016_s30 = smov 4  }
  0x14   :  { %88 = dma.hbm_to_vmem [thread:$0]  %s81_s25, 4096, %s83_s28, [#allocation12], %s5015_s29, %s5015_s29, %s5016_s30  }
  0x15   :  { %4997 = dma.done.wait [#allocation3], 224  }
  0x16   :  { %4998 = vsyncadd [#allocation3], 4294967072 }
  0x17   :  { %4999 = dma.done.wait [#allocation6], 25152  }
  0x18   :  { %5000 = vsyncadd [#allocation6], 4294942144 }
  0x19   :  { %5001 = dma.done.wait [#allocation9], 16448  }
  0x1a   :  { %5002 = vsyncadd [#allocation9], 4294950848 }
  0x1b   :  { %5003 = dma.done.wait [#allocation12], 4096  }
  0x1c   :  { %5004 = vsyncadd [#allocation12], 4294963200  ;;  %v3147_v0 = vld [vmem:[#allocation5 + $0xe0] sm:$0xf]  ;;  %v4491_v1 = vld [vmem:[#allocation5 + $0xec] sm:$0xf0] }
  0x1d   :  { %v3275_v2 = vld [vmem:[#allocation5 + $0x1e0] sm:$0xf]  ;;  %v3148_v3 = vor.u32 %v4491_v1, %v3147_v0  ;;  %v4523_v4 = vld [vmem:[#allocation5 + $0x1ec] sm:$0xf0]  ;;  %vm1330_vm0 = vcmask 130048   ;;  %s5017_s8 = smov [#allocation13]  }
  0x1e   :  { %v3403_v5 = vld [vmem:[#allocation5 + $0x2e0] sm:$0xf]  ;;  %v4555_v6 = vld [vmem:[#allocation5 + $0x2ec] sm:$0xf0]  ;;  %v3276_v7 = vor.u32 %v4523_v4, %v3275_v2  ;;  %s3018_s9 = sshll.u32 %s5017_s8, 4  ;;  %s3020_s12 = sshll.u32 %s5219_s7, 4  ;;  %s3019_s9 = int_to_ptr.vmem [resolvable:$true] %s3018_s9  ;;  %s3021_s12 = int_to_ptr.hbm [resolvable:$true] %s3020_s12 }
  0x1f   :  { %v3404_v8 = vor.u32 %v4555_v6, %v3403_v5  ;;  %v3531_v9 = vld [vmem:[#allocation5 + $0x3e0] sm:$0xf]  ;;  %v4587_v10 = vld [vmem:[#allocation5 + $0x3ec] sm:$0xf0]  ;;  %1334 = vmatpush.bf16.msra.mxu0 %v3148_v3 }
  0x20   :  { %v3131_v11 = vld [vmem:[#allocation5 + $0xc0] sm:$0xf]  ;;  %v3532_v12 = vor.u32 %v4587_v10, %v3531_v9  ;;  %v4487_v13 = vld [vmem:[#allocation5 + $0xcc] sm:$0xf0]  ;;  %1347 = vmatpush.bf16.msra.mxu1 %v3276_v7 }
  0x21   :  { %v3259_v14 = vld [vmem:[#allocation5 + $0x1c0] sm:$0xf]  ;;  %v4519_v15 = vld [vmem:[#allocation5 + $0x1cc] sm:$0xf0]  ;;  %1360 = vmatpush.bf16.msra.mxu2 %v3404_v8  ;;  %v3132_v16 = vor.u32 %v4487_v13, %v3131_v11 }
  0x22   :  { %v3260_v17 = vor.u32 %v4519_v15, %v3259_v14  ;;  %v3387_v18 = vld [vmem:[#allocation5 + $0x2c0] sm:$0xf]  ;;  %v4551_v19 = vld [vmem:[#allocation5 + $0x2cc] sm:$0xf0]  ;;  %1373 = vmatpush.bf16.msra.mxu3 %v3532_v12 }
  0x23   :  { %v3515_v20 = vld [vmem:[#allocation5 + $0x3c0] sm:$0xf]  ;;  %v3388_v21 = vor.u32 %v4551_v19, %v3387_v18  ;;  %v4583_v22 = vld [vmem:[#allocation5 + $0x3cc] sm:$0xf0]  ;;  %1335 = vmatpush.bf16.msra.mxu0 %v3132_v16 }
  0x24   :  { %v3115_v23 = vld [vmem:[#allocation5 + $0xa0] sm:$0xf]  ;;  %v4483_v24 = vld [vmem:[#allocation5 + $0xac] sm:$0xf0]  ;;  %v3516_v25 = vor.u32 %v4583_v22, %v3515_v20  ;;  %1348 = vmatpush.bf16.msra.mxu1 %v3260_v17 }
  0x25   :  { %v3243_v26 = vld [vmem:[#allocation5 + $0x1a0] sm:$0xf]  ;;  %v4515_v27 = vld [vmem:[#allocation5 + $0x1ac] sm:$0xf0]  ;;  %v3116_v29 = vor.u32 %v4483_v24, %v3115_v23  ;;  %1361 = vmatpush.bf16.msra.mxu2 %v3388_v21 }
  0x26   :  { %v3371_v28 = vld [vmem:[#allocation5 + $0x2a0] sm:$0xf]  ;;  %v4547_v30 = vld [vmem:[#allocation5 + $0x2ac] sm:$0xf0]  ;;  %v3244_v33 = vor.u32 %v4515_v27, %v3243_v26  ;;  %1374 = vmatpush.bf16.msra.mxu3 %v3516_v25 }
  0x27   :  { %v3499_v31 = vld [vmem:[#allocation5 + $0x3a0] sm:$0xf]  ;;  %v4579_v32 = vld [vmem:[#allocation5 + $0x3ac] sm:$0xf0]  ;;  %v3372_v34 = vor.u32 %v4547_v30, %v3371_v28  ;;  %1336 = vmatpush.bf16.msra.mxu0 %v3116_v29 }
  0x28   :  { %v3099_v35 = vld [vmem:[#allocation5 + $0x80] sm:$0xf]  ;;  %v4479_v36 = vld [vmem:[#allocation5 + $0x8c] sm:$0xf0]  ;;  %v3500_v38 = vor.u32 %v4579_v32, %v3499_v31  ;;  %1349 = vmatpush.bf16.msra.mxu1 %v3244_v33 }
  0x29   :  { %v3227_v37 = vld [vmem:[#allocation5 + $0x180] sm:$0xf]  ;;  %v4511_v39 = vld [vmem:[#allocation5 + $0x18c] sm:$0xf0]  ;;  %v3100_v44 = vor.u32 %v4479_v36, %v3099_v35  ;;  %1362 = vmatpush.bf16.msra.mxu2 %v3372_v34  ;;  %v4489_v34 = vld [vmem:[#allocation5 + $0xe4] sm:$0xf] }
  0x2a   :  { %v3355_v40 = vld [vmem:[#allocation5 + $0x280] sm:$0xf]  ;;  %v4543_v41 = vld [vmem:[#allocation5 + $0x28c] sm:$0xf0]  ;;  %v3228_v45 = vor.u32 %v4511_v39, %v3227_v37  ;;  %1375 = vmatpush.bf16.msra.mxu3 %v3500_v38  ;;  %v3149_v35 = vld [vmem:[#allocation5 + $0xf0] sm:$0xf0] }
  0x2b   :  { %v3483_v42 = vld [vmem:[#allocation5 + $0x380] sm:$0xf]  ;;  %v4575_v43 = vld [vmem:[#allocation5 + $0x38c] sm:$0xf0]  ;;  %v3356_v46 = vor.u32 %v4543_v41, %v3355_v40  ;;  %1337 = vmatpush.bf16.msra.mxu0 %v3100_v44  ;;  %v4521_v40 = vld [vmem:[#allocation5 + $0x1e4] sm:$0xf] }
  0x2c   :  { %v3083_v47 = vld [vmem:[#allocation5 + $0x60] sm:$0xf]  ;;  %v4475_v48 = vld [vmem:[#allocation5 + $0x6c] sm:$0xf0]  ;;  %v3484_v50 = vor.u32 %v4575_v43, %v3483_v42  ;;  %1350 = vmatpush.bf16.msra.mxu1 %v3228_v45  ;;  %v3277_v41 = vld [vmem:[#allocation5 + $0x1f0] sm:$0xf0] }
  0x2d   :  { %v3211_v49 = vld [vmem:[#allocation5 + $0x160] sm:$0xf]  ;;  %v4507_v51 = vld [vmem:[#allocation5 + $0x16c] sm:$0xf0]  ;;  %v3084_v56 = vor.u32 %v4475_v48, %v3083_v47  ;;  %1363 = vmatpush.bf16.msra.mxu2 %v3356_v46  ;;  %v3152_v48 = vor.u32 %v4489_v34, %v3149_v35 }
  0x2e   :  { %v3339_v52 = vld [vmem:[#allocation5 + $0x260] sm:$0xf]  ;;  %v4539_v53 = vld [vmem:[#allocation5 + $0x26c] sm:$0xf0]  ;;  %v3212_v57 = vor.u32 %v4507_v51, %v3211_v49  ;;  %1376 = vmatpush.bf16.msra.mxu3 %v3484_v50  ;;  %v4485_v50 = vld [vmem:[#allocation5 + $0xc4] sm:$0xf] }
  0x2f   :  { %v3467_v54 = vld [vmem:[#allocation5 + $0x360] sm:$0xf]  ;;  %v4571_v55 = vld [vmem:[#allocation5 + $0x36c] sm:$0xf0]  ;;  %v3340_v58 = vor.u32 %v4539_v53, %v3339_v52  ;;  %1338 = vmatpush.bf16.msra.mxu0 %v3084_v56  ;;  %v3133_v51 = vld [vmem:[#allocation5 + $0xd0] sm:$0xf0] }
  0x30   :  { %v3067_v59 = vld [vmem:[#allocation5 + $0x40] sm:$0xf]  ;;  %v4471_v60 = vld [vmem:[#allocation5 + $0x4c] sm:$0xf0]  ;;  %v3468_v62 = vor.u32 %v4571_v55, %v3467_v54  ;;  %1351 = vmatpush.bf16.msra.mxu1 %v3212_v57 }
  0x31   :  { %v3195_v61 = vld [vmem:[#allocation5 + $0x140] sm:$0xf]  ;;  %v4503_v63 = vld [vmem:[#allocation5 + $0x14c] sm:$0xf0]  ;;  %v3068_v4 = vor.u32 %v4471_v60, %v3067_v59  ;;  %1364 = vmatpush.bf16.msra.mxu2 %v3340_v58  ;;  %v3280_v59 = vor.u32 %v4521_v40, %v3277_v41 }
  0x32   :  { %v3323_v0 = vld [vmem:[#allocation5 + $0x240] sm:$0xf]  ;;  %v4535_v1 = vld [vmem:[#allocation5 + $0x24c] sm:$0xf0]  ;;  %v3196_v6 = vor.u32 %v4503_v63, %v3195_v61  ;;  %1377 = vmatpush.bf16.msra.mxu3 %v3468_v62  ;;  %v4517_v61 = vld [vmem:[#allocation5 + $0x1c4] sm:$0xf] }
  0x33   :  { %v3451_v2 = vld [vmem:[#allocation5 + $0x340] sm:$0xf]  ;;  %v4567_v3 = vld [vmem:[#allocation5 + $0x34c] sm:$0xf0]  ;;  %v3324_v7 = vor.u32 %v4535_v1, %v3323_v0  ;;  %1339 = vmatpush.bf16.msra.mxu0 %v3068_v4  ;;  %v3261_v62 = vld [vmem:[#allocation5 + $0x1d0] sm:$0xf0]  ;;  %v3136_v1 = vor.u32 %v4485_v50, %v3133_v51 }
  0x34   :  { %v3051_v5 = vld [vmem:[#allocation5 + $0x20] sm:$0xf]  ;;  %v4467_v8 = vld [vmem:[#allocation5 + $0x2c] sm:$0xf0]  ;;  %v3452_v11 = vor.u32 %v4567_v3, %v3451_v2  ;;  %1352 = vmatpush.bf16.msra.mxu1 %v3196_v6  ;;  %v4481_v6 = vld [vmem:[#allocation5 + $0xa4] sm:$0xf] }
  0x35   :  { %v3179_v9 = vld [vmem:[#allocation5 + $0x120] sm:$0xf]  ;;  %v4499_v10 = vld [vmem:[#allocation5 + $0x12c] sm:$0xf0]  ;;  %v3052_v18 = vor.u32 %v4467_v8, %v3051_v5  ;;  %1365 = vmatpush.bf16.msra.mxu2 %v3324_v7  ;;  %v3117_v7 = vld [vmem:[#allocation5 + $0xb0] sm:$0xf0] }
  0x36   :  { %v3307_v12 = vld [vmem:[#allocation5 + $0x220] sm:$0xf]  ;;  %v4531_v13 = vld [vmem:[#allocation5 + $0x22c] sm:$0xf0]  ;;  %v3180_v22 = vor.u32 %v4499_v10, %v3179_v9  ;;  %1378 = vmatpush.bf16.msra.mxu3 %v3452_v11  ;;  %v3264_v9 = vor.u32 %v4517_v61, %v3261_v62  ;;  %v4513_v11 = vld [vmem:[#allocation5 + $0x1a4] sm:$0xf] }
  0x37   :  { %v3435_v14 = vld [vmem:[#allocation5 + $0x320] sm:$0xf]  ;;  %v4563_v15 = vld [vmem:[#allocation5 + $0x32c] sm:$0xf0]  ;;  %v3308_v23 = vor.u32 %v4531_v13, %v3307_v12  ;;  %1340 = vmatpush.bf16.msra.mxu0 %v3052_v18  ;;  %v3245_v12 = vld [vmem:[#allocation5 + $0x1b0] sm:$0xf0] }
  0x38   :  { %v3035_v16 = vld [vmem:[#allocation5] sm:$0xf]  ;;  %v4463_v17 = vld [vmem:[#allocation5 + $0xc] sm:$0xf0]  ;;  %v3436_v26 = vor.u32 %v4563_v15, %v3435_v14  ;;  %1353 = vmatpush.bf16.msra.mxu1 %v3180_v22  ;;  %v3120_v14 = vor.u32 %v4481_v6, %v3117_v7  ;;  %v3248_v22 = vor.u32 %v4513_v11, %v3245_v12  ;;  %v4497_v62 = vld [vmem:[#allocation5 + $0x124] sm:$0xf] }
  0x39   :  { %v3163_v19 = vld [vmem:[#allocation5 + $0x100] sm:$0xf]  ;;  %v4495_v20 = vld [vmem:[#allocation5 + $0x10c] sm:$0xf0]  ;;  %v3036_v33 = vor.u32 %v4463_v17, %v3035_v16  ;;  %1366 = vmatpush.bf16.msra.mxu2 %v3308_v23  ;;  %v3037_v11 = vld [vmem:[#allocation5 + $0x10] sm:$0xf0] }
  0x3a   :  { %v116_v21 = vld [vmem:[#allocation2] sm:$0xff]  ;;  %v3291_v24 = vld [vmem:[#allocation5 + $0x200] sm:$0xf]  ;;  %v3164_v37 = vor.u32 %v4495_v20, %v3163_v19  ;;  %1379 = vmatpush.bf16.msra.mxu3 %v3436_v26  ;;  %v4477_v19 = vld [vmem:[#allocation5 + $0x84] sm:$0xf] }
  0x3b   :  { %v4527_v25 = vld [vmem:[#allocation5 + $0x20c] sm:$0xf0]  ;;  %120 = vst [vmem:[#allocation1] ss:$4 sm:$0xff] %v116_v21  ;;  %v3419_v27 = vld [vmem:[#allocation5 + $0x300] sm:$0xf]  ;;  %1341 = vmatpush.bf16.msra.mxu0 %v3036_v33 }
  0x3c   :  { %v4559_v28 = vld [vmem:[#allocation5 + $0x30c] sm:$0xf0]  ;;  %v3659_v29 = vld [vmem:[#allocation5 + $0x4e0] sm:$0xf]  ;;  %v3292_v38 = vor.u32 %v4527_v25, %v3291_v24  ;;  %1354 = vmatpush.bf16.msra.mxu1 %v3164_v37  ;;  %v3101_v20 = vld [vmem:[#allocation5 + $0x90] sm:$0xf0] }
  0x3d   :  { %v4619_v30 = vld [vmem:[#allocation5 + $0x4ec] sm:$0xf0]  ;;  %v3787_v31 = vld [vmem:[#allocation5 + $0x5e0] sm:$0xf]  ;;  %v3420_v42 = vor.u32 %v4559_v28, %v3419_v27  ;;  %v4509_v21 = vld [vmem:[#allocation5 + $0x184] sm:$0xf]  ;;  %v3104_v28 = vor.u32 %v4477_v19, %v3101_v20 }
  0x3e   :  { %v4651_v32 = vld [vmem:[#allocation5 + $0x5ec] sm:$0xf0]  ;;  %v3803_v36 = vld [vmem:[#allocation5 + $0x600] sm:$0xf]  ;;  %v3660_v43 = vor.u32 %v4619_v30, %v3659_v29  ;;  %1367 = vmatpush.bf16.msra.mxu2 %v3292_v38  ;;  %v3229_v24 = vld [vmem:[#allocation5 + $0x190] sm:$0xf0] }
  0x3f   :  { %v4655_v39 = vld [vmem:[#allocation5 + $0x60c] sm:$0xf0]  ;;  %v3643_v44 = vld [vmem:[#allocation5 + $0x4c0] sm:$0xf]  ;;  %v3788_v47 = vor.u32 %v4651_v32, %v3787_v31  ;;  %1380 = vmatpush.bf16.msra.mxu3 %v3420_v42  ;;  %v117_v31 = vld [vmem:[#allocation2 + $0x8] sm:$0x3f]  ;;  %v3232_v34 = vor.u32 %v4509_v21, %v3229_v24 }
  0x40   :  { %v4615_v45 = vld [vmem:[#allocation5 + $0x4cc] sm:$0xf0]  ;;  %v3771_v46 = vld [vmem:[#allocation5 + $0x5c0] sm:$0xf]  ;;  %v3804_v55 = vor.u32 %v4655_v39, %v3803_v36  ;;  %1386 = vmatpush.bf16.msrb.mxu0 %v3660_v43  ;;  %v4473_v32 = vld [vmem:[#allocation5 + $0x64] sm:$0xf] }
  0x41   :  { %v4647_v49 = vld [vmem:[#allocation5 + $0x5cc] sm:$0xf0]  ;;  %v3644_v60 = vor.u32 %v4615_v45, %v3643_v44  ;;  %1399 = vmatpush.bf16.msrb.mxu1 %v3788_v47  ;;  %v3627_v2 = vld [vmem:[#allocation5 + $0x4a0] sm:$0xf]  ;;  %v3085_v33 = vld [vmem:[#allocation5 + $0x70] sm:$0xf0] }
  0x42   :  { %v125_v52 = vld.sshfl [vmem:[#allocation1 + $0x10] sm:$0xff pattern:$0x73625140]  ;;  %v123_v53 = vld.sshfl [vmem:[#allocation1] sm:$0xff pattern:$0x73625140]  ;;  %v3772_v0 = vor.u32 %v4647_v49, %v3771_v46  ;;  %1419 = vmatpush.bf16.msrb.mxu2 %v3804_v55  ;;  %v3088_v39 = vor.u32 %v4473_v32, %v3085_v33 }
  0x43   :  { %v5076_v54 = vpack.c.bf16 %v125_v52, %v125_v52  ;;  %v5078_v56 = vpack.c.bf16 %v123_v53, %v123_v53  ;;  %v126_v57 = vld.sshfl [vmem:[#allocation1 + $0x18] sm:$0xff pattern:$0x73625140]  ;;  %v124_v58 = vld.sshfl [vmem:[#allocation1 + $0x8] sm:$0xff pattern:$0x73625140]  ;;  %1425 = vmatpush.bf16.msrb.mxu3 %v3152_v48 }
  0x44   :  { %v5080_v63 = vpack.c.bf16 %v126_v57, %v126_v57  ;;  %v4611_v3 = vld [vmem:[#allocation5 + $0x4ac] sm:$0xf0]  ;;  %v3755_v4 = vld [vmem:[#allocation5 + $0x5a0] sm:$0xf]  ;;  %v5084_v8 = vpack.c.bf16 %v124_v58, %v124_v58  ;;  %1387 = vmatpush.bf16.msrb.mxu0 %v3644_v60  ;;  %122 = vst [vmem:[#allocation1 + $0x20] ss:$4 sm:$0xff] %v117_v31 }
  0x45   :  { %1368 = vmatmul.bf16.vlgmr.msra.gmra.mxu2 %v5076_v54  ;;  %1342 = vmatmul.bf16.vlgmr.msra.gmra.mxu0 %v5078_v56  ;;  %v4643_v5 = vld [vmem:[#allocation5 + $0x5ac] sm:$0xf0]  ;;  %v3628_v10 = vor.u32 %v4611_v3, %v3627_v2  ;;  %v3611_v15 = vld [vmem:[#allocation5 + $0x480] sm:$0xf]  ;;  %v4505_v36 = vld [vmem:[#allocation5 + $0x164] sm:$0xf] }
  0x46   :  { %1381 = vmatmul.bf16.vlgmr.msra.gmra.mxu3 %v5080_v63  ;;  %1438 = vmatpush.bf16.msra.mxu2 %v3280_v59  ;;  %v3756_v13 = vor.u32 %v4643_v5, %v3755_v4  ;;  %v4607_v16 = vld [vmem:[#allocation5 + $0x48c] sm:$0xf0]  ;;  %v3739_v17 = vld [vmem:[#allocation5 + $0x580] sm:$0xf]  ;;  %v3213_v37 = vld [vmem:[#allocation5 + $0x170] sm:$0xf0] }
  0x47   :  { %1400 = vmatpush.bf16.msrb.mxu1 %v3772_v0  ;;  %1426 = vmatpush.bf16.msrb.mxu3 %v3136_v1  ;;  %v4639_v18 = vld [vmem:[#allocation5 + $0x58c] sm:$0xf0]  ;;  %v3612_v23 = vor.u32 %v4607_v16, %v3611_v15  ;;  %v3595_v25 = vld [vmem:[#allocation5 + $0x460] sm:$0xf]  ;;  %v4469_v44 = vld [vmem:[#allocation5 + $0x44] sm:$0xf]  ;;  %v3216_v47 = vor.u32 %v4505_v36, %v3213_v37 }
  0x48   :  { %1355 = vmatmul.bf16.vlgmr.msra.gmra.mxu1 %v5084_v8  ;;  %1388 = vmatpush.bf16.msrb.mxu0 %v3628_v10  ;;  %v4603_v26 = vld [vmem:[#allocation5 + $0x46c] sm:$0xf0]  ;;  %v3740_v27 = vor.u32 %v4639_v18, %v3739_v17  ;;  %v3723_v29 = vld [vmem:[#allocation5 + $0x560] sm:$0xf]  ;;  %v3069_v45 = vld [vmem:[#allocation5 + $0x50] sm:$0xf0] }
  0x49   :  { %v4635_v30 = vld [vmem:[#allocation5 + $0x56c] sm:$0xf0]  ;;  %v3596_v35 = vor.u32 %v4603_v26, %v3595_v25  ;;  %v3579_v40 = vld [vmem:[#allocation5 + $0x440] sm:$0xf]  ;;  %v4501_v46 = vld [vmem:[#allocation5 + $0x144] sm:$0xf]  ;;  %v3072_v53 = vor.u32 %v4469_v44, %v3069_v45 }
  0x4a   :  { %1439 = vmatpush.bf16.msra.mxu2 %v3264_v9  ;;  %v3724_v38 = vor.u32 %v4635_v30, %v3723_v29  ;;  %v4599_v41 = vld [vmem:[#allocation5 + $0x44c] sm:$0xf0]  ;;  %v3707_v42 = vld [vmem:[#allocation5 + $0x540] sm:$0xf]  ;;  %v3197_v49 = vld [vmem:[#allocation5 + $0x150] sm:$0xf0] }
  0x4b   :  { %1401 = vmatpush.bf16.msrb.mxu1 %v3756_v13  ;;  %1427 = vmatpush.bf16.msrb.mxu3 %v3120_v14  ;;  %v4631_v43 = vld [vmem:[#allocation5 + $0x54c] sm:$0xf0]  ;;  %v3580_v48 = vor.u32 %v4599_v41, %v3579_v40  ;;  %v3563_v50 = vld [vmem:[#allocation5 + $0x420] sm:$0xf]  ;;  %v4465_v59 = vld [vmem:[#allocation5 + $0x24] sm:$0xf]  ;;  %v3200_v1 = vor.u32 %v4501_v46, %v3197_v49 }
  0x4c   :  { %1389 = vmatpush.bf16.msrb.mxu0 %v3612_v23  ;;  %v4595_v51 = vld [vmem:[#allocation5 + $0x42c] sm:$0xf0]  ;;  %v3708_v52 = vor.u32 %v4631_v43, %v3707_v42  ;;  %v3691_v55 = vld [vmem:[#allocation5 + $0x520] sm:$0xf]  ;;  %v3053_v60 = vld [vmem:[#allocation5 + $0x30] sm:$0xf0] }
  0x4d   :  { %v129_v57 = vld.sshfl [vmem:[#allocation1 + $0x30] sm:$0xff pattern:$0x73625140]  ;;  %v4627_v58 = vld [vmem:[#allocation5 + $0x52c] sm:$0xf0]  ;;  %v3564_v2 = vor.u32 %v4595_v51, %v3563_v50  ;;  %v3056_v7 = vor.u32 %v4465_v59, %v3053_v60 }
  0x4e   :  { %1440 = vmatpush.bf16.msra.mxu2 %v3248_v22  ;;  %v5088_v61 = vpack.c.bf16 %v129_v57, %v129_v57  ;;  %v3181_v0 = vld [vmem:[#allocation5 + $0x130] sm:$0xf0]  ;;  %v3547_v3 = vld [vmem:[#allocation5 + $0x400] sm:$0xf]  ;;  %v4591_v4 = vld [vmem:[#allocation5 + $0x40c] sm:$0xf0]  ;;  %v3692_v6 = vor.u32 %v4627_v58, %v3691_v55 }
  0x4f   :  { %1402 = vmatpush.bf16.msrb.mxu1 %v3740_v27  ;;  %1428 = vmatpush.bf16.msrb.mxu3 %v3104_v28  ;;  %v3675_v5 = vld [vmem:[#allocation5 + $0x500] sm:$0xf]  ;;  %v4623_v9 = vld [vmem:[#allocation5 + $0x50c] sm:$0xf0]  ;;  %v4461_v10 = vld [vmem:[#allocation5 + $0x4] sm:$0xf]  ;;  %v3184_v18 = vor.u32 %v4497_v62, %v3181_v0  ;;  %v3548_v19 = vor.u32 %v4591_v4, %v3547_v3 }
  0x50   :  { %1390 = vmatpush.bf16.msrb.mxu0 %v3596_v35  ;;  %v4553_v12 = vld [vmem:[#allocation5 + $0x2e4] sm:$0xf]  ;;  %v3405_v13 = vld [vmem:[#allocation5 + $0x2f0] sm:$0xf0]  ;;  %v3676_v22 = vor.u32 %v4623_v9, %v3675_v5  ;;  %v3040_v23 = vor.u32 %v4461_v10, %v3037_v11 }
  0x51   :  { %v4585_v14 = vld [vmem:[#allocation5 + $0x3e4] sm:$0xf]  ;;  %v3533_v15 = vld [vmem:[#allocation5 + $0x3f0] sm:$0xf0]  ;;  %v3408_v26 = vor.u32 %v4553_v12, %v3405_v13 }
  0x52   :  { %1441 = vmatpush.bf16.msra.mxu2 %v3232_v34  ;;  %v4617_v16 = vld [vmem:[#allocation5 + $0x4e4] sm:$0xf]  ;;  %v3661_v17 = vld [vmem:[#allocation5 + $0x4f0] sm:$0xf0]  ;;  %v3536_v27 = vor.u32 %v4585_v14, %v3533_v15 }
  0x53   :  { %1403 = vmatpush.bf16.msrb.mxu1 %v3724_v38  ;;  %1429 = vmatpush.bf16.msrb.mxu3 %v3088_v39  ;;  %v127_v20 = vld.sshfl [vmem:[#allocation1 + $0x20] sm:$0xff pattern:$0x73625140]  ;;  %v4493_v21 = vld [vmem:[#allocation5 + $0x104] sm:$0xf]  ;;  %v3664_v31 = vor.u32 %v4617_v16, %v3661_v17 }
  0x54   :  { %1391 = vmatpush.bf16.msrb.mxu0 %v3580_v48  ;;  %v3165_v24 = vld [vmem:[#allocation5 + $0x110] sm:$0xf0]  ;;  %v4649_v28 = vld [vmem:[#allocation5 + $0x5e4] sm:$0xf]  ;;  %v5092_v32 = vpack.c.bf16 %v127_v20, %v127_v20 }
  0x55   :  { %3817 = vmatmul.msk.bf16.vlgmr.msrb.gmra.mxu2 %vm1330_vm0, %v5088_v61  ;;  %v128_v25 = vld.sshfl [vmem:[#allocation1 + $0x28] sm:$0xff pattern:$0x73625140]  ;;  %v4549_v30 = vld [vmem:[#allocation5 + $0x2c4] sm:$0xf]  ;;  %v3168_v36 = vor.u32 %v4493_v21, %v3165_v24 }
  0x56   :  { %1442 = vmatpush.bf16.msra.mxu2 %v3216_v47  ;;  %v3789_v29 = vld [vmem:[#allocation5 + $0x5f0] sm:$0xf0]  ;;  %v4581_v34 = vld [vmem:[#allocation5 + $0x3c4] sm:$0xf]  ;;  %v5094_v37 = vpack.c.bf16 %v128_v25, %v128_v25 }
  0x57   :  { %1404 = vmatpush.bf16.msrb.mxu1 %v3708_v52  ;;  %1430 = vmatpush.bf16.msrb.mxu3 %v3072_v53  ;;  %v3389_v33 = vld [vmem:[#allocation5 + $0x2d0] sm:$0xf0]  ;;  %v4613_v38 = vld [vmem:[#allocation5 + $0x4c4] sm:$0xf]  ;;  %v3792_v40 = vor.u32 %v4649_v28, %v3789_v29 }
  0x58   :  { %1392 = vmatpush.bf16.msrb.mxu0 %v3564_v2  ;;  %v3517_v35 = vld [vmem:[#allocation5 + $0x3d0] sm:$0xf0]  ;;  %v3392_v41 = vor.u32 %v4549_v30, %v3389_v33  ;;  %v4645_v43 = vld [vmem:[#allocation5 + $0x5c4] sm:$0xf] }
  0x59   :  { %v3645_v39 = vld [vmem:[#allocation5 + $0x4d0] sm:$0xf0]  ;;  %v3520_v42 = vor.u32 %v4581_v34, %v3517_v35  ;;  %v4545_v45 = vld [vmem:[#allocation5 + $0x2a4] sm:$0xf] }
  0x5a   :  { %1443 = vmatpush.bf16.msra.mxu2 %v3200_v1  ;;  %v3773_v44 = vld [vmem:[#allocation5 + $0x5d0] sm:$0xf0]  ;;  %v3648_v46 = vor.u32 %v4613_v38, %v3645_v39  ;;  %v4577_v48 = vld [vmem:[#allocation5 + $0x3a4] sm:$0xf] }
  0x5b   :  { %1405 = vmatpush.bf16.msrb.mxu1 %v3692_v6  ;;  %1431 = vmatpush.bf16.msrb.mxu3 %v3056_v7  ;;  %v3373_v47 = vld [vmem:[#allocation5 + $0x2b0] sm:$0xf0]  ;;  %v4609_v50 = vld [vmem:[#allocation5 + $0x4a4] sm:$0xf]  ;;  %v3776_v52 = vor.u32 %v4645_v43, %v3773_v44 }
  0x5c   :  { %1393 = vmatpush.bf16.msrb.mxu0 %v3548_v19  ;;  %v3501_v49 = vld [vmem:[#allocation5 + $0x3b0] sm:$0xf0]  ;;  %v3376_v53 = vor.u32 %v4545_v45, %v3373_v47  ;;  %v4641_v57 = vld [vmem:[#allocation5 + $0x5a4] sm:$0xf] }
  0x5d   :  { %v3629_v51 = vld [vmem:[#allocation5 + $0x4b0] sm:$0xf0]  ;;  %v3504_v55 = vor.u32 %v4577_v48, %v3501_v49  ;;  %v4541_v59 = vld [vmem:[#allocation5 + $0x284] sm:$0xf] }
  0x5e   :  { %1444 = vmatpush.bf16.msra.mxu2 %v3184_v18  ;;  %v3757_v58 = vld [vmem:[#allocation5 + $0x5b0] sm:$0xf0]  ;;  %v3632_v60 = vor.u32 %v4609_v50, %v3629_v51  ;;  %v4573_v0 = vld [vmem:[#allocation5 + $0x384] sm:$0xf] }
  0x5f   :  { %1406 = vmatpush.bf16.msrb.mxu1 %v3676_v22  ;;  %1432 = vmatpush.bf16.msrb.mxu3 %v3040_v23  ;;  %v3357_v62 = vld [vmem:[#allocation5 + $0x290] sm:$0xf0]  ;;  %v4605_v2 = vld [vmem:[#allocation5 + $0x484] sm:$0xf]  ;;  %v3760_v4 = vor.u32 %v4641_v57, %v3757_v58  ;;  %v3155_v57 = vld [vmem:[#allocation5 + $0xe8] sm:$0xf] }
  0x60   :  { %1451 = vmatpush.bf16.msra.mxu0 %v3408_v26  ;;  %v3485_v1 = vld [vmem:[#allocation5 + $0x390] sm:$0xf0]  ;;  %v3360_v5 = vor.u32 %v4541_v59, %v3357_v62  ;;  %v4637_v7 = vld [vmem:[#allocation5 + $0x584] sm:$0xf]  ;;  %v4492_v58 = vld [vmem:[#allocation5 + $0xf4] sm:$0xf0] }
  0x61   :  { %1394 = vmatmul.bf16.vlgmr.msrb.gmra.mxu0 %v5092_v32  ;;  %v3613_v3 = vld [vmem:[#allocation5 + $0x490] sm:$0xf0]  ;;  %v3488_v6 = vor.u32 %v4573_v0, %v3485_v1  ;;  %v4537_v10 = vld [vmem:[#allocation5 + $0x264] sm:$0xf]  ;;  %v3411_v0 = vld [vmem:[#allocation5 + $0x2e8] sm:$0xf] }
  0x62   :  { %1445 = vmatpush.bf16.msra.mxu2 %v3168_v36  ;;  %1407 = vmatmul.bf16.vlgmr.msrb.gmra.mxu1 %v5094_v37  ;;  %v3741_v9 = vld [vmem:[#allocation5 + $0x590] sm:$0xf0]  ;;  %v3616_v11 = vor.u32 %v4605_v2, %v3613_v3  ;;  %v4569_v13 = vld [vmem:[#allocation5 + $0x364] sm:$0xf]  ;;  %v4556_v1 = vld [vmem:[#allocation5 + $0x2f4] sm:$0xf0] }
  0x63   :  { %1464 = vmatpush.bf16.msra.mxu1 %v3536_v27  ;;  %1477 = vmatpush.bf16.msra.mxu3 %v3664_v31  ;;  %v3341_v12 = vld [vmem:[#allocation5 + $0x270] sm:$0xf0]  ;;  %v4601_v15 = vld [vmem:[#allocation5 + $0x464] sm:$0xf]  ;;  %v3744_v17 = vor.u32 %v4637_v7, %v3741_v9  ;;  %v3156_v7 = vor.u32 %v4492_v58, %v3155_v57  ;;  %v3539_v9 = vld [vmem:[#allocation5 + $0x3e8] sm:$0xf] }
  0x64   :  { %1433 = vmatmul.bf16.vlgmr.msrb.gmra.mxu3 %v5078_v56  ;;  %1452 = vmatpush.bf16.msra.mxu0 %v3392_v41  ;;  %v3469_v14 = vld [vmem:[#allocation5 + $0x370] sm:$0xf0]  ;;  %v3344_v18 = vor.u32 %v4537_v10, %v3341_v12  ;;  %v4633_v20 = vld [vmem:[#allocation5 + $0x564] sm:$0xf]  ;;  %v4588_v10 = vld [vmem:[#allocation5 + $0x3f4] sm:$0xf0] }
  0x65   :  { %1446 = vmatmul.bf16.vlgmr.msra.gmra.mxu2 %v5084_v8  ;;  %v3597_v16 = vld [vmem:[#allocation5 + $0x470] sm:$0xf0]  ;;  %v3472_v19 = vor.u32 %v4569_v13, %v3469_v14  ;;  %v4533_v22 = vld [vmem:[#allocation5 + $0x244] sm:$0xf]  ;;  %v3283_v12 = vld [vmem:[#allocation5 + $0x1e8] sm:$0xf]  ;;  %v3412_v14 = vor.u32 %v4556_v1, %v3411_v0 }
  0x66   :  { %1490 = vmatpush.bf16.msrb.mxu2 %v3792_v40  ;;  %v3725_v21 = vld [vmem:[#allocation5 + $0x570] sm:$0xf0]  ;;  %v3600_v23 = vor.u32 %v4601_v15, %v3597_v16  ;;  %v4565_v25 = vld [vmem:[#allocation5 + $0x344] sm:$0xf]  ;;  %v4524_v13 = vld [vmem:[#allocation5 + $0x1f4] sm:$0xf0] }
  0x67   :  { %1465 = vmatpush.bf16.msra.mxu1 %v3520_v42  ;;  %1478 = vmatpush.bf16.msra.mxu3 %v3648_v46  ;;  %v3325_v24 = vld [vmem:[#allocation5 + $0x250] sm:$0xf0]  ;;  %v4597_v27 = vld [vmem:[#allocation5 + $0x444] sm:$0xf]  ;;  %v3728_v29 = vor.u32 %v4633_v20, %v3725_v21  ;;  %v3139_v16 = vld [vmem:[#allocation5 + $0xc8] sm:$0xf]  ;;  %v3284_v21 = vor.u32 %v4524_v13, %v3283_v12 }
  0x68   :  { %1453 = vmatpush.bf16.msra.mxu0 %v3376_v53  ;;  %v3453_v26 = vld [vmem:[#allocation5 + $0x350] sm:$0xf0]  ;;  %v3328_v30 = vor.u32 %v4533_v22, %v3325_v24  ;;  %v4629_v33 = vld [vmem:[#allocation5 + $0x544] sm:$0xf]  ;;  %v4552_v20 = vld [vmem:[#allocation5 + $0x2d4] sm:$0xf0] }
  0x69   :  { %v3581_v28 = vld [vmem:[#allocation5 + $0x450] sm:$0xf0]  ;;  %v3456_v31 = vor.u32 %v4565_v25, %v3453_v26  ;;  %v4529_v35 = vld [vmem:[#allocation5 + $0x224] sm:$0xf]  ;;  %v3523_v22 = vld [vmem:[#allocation5 + $0x3c8] sm:$0xf] }
  0x6a   :  { %1491 = vmatpush.bf16.msrb.mxu2 %v3776_v52  ;;  %v3709_v34 = vld [vmem:[#allocation5 + $0x550] sm:$0xf0]  ;;  %v3584_v36 = vor.u32 %v4597_v27, %v3581_v28  ;;  %v4561_v39 = vld [vmem:[#allocation5 + $0x324] sm:$0xf]  ;;  %v3267_v25 = vld [vmem:[#allocation5 + $0x1c8] sm:$0xf] }
  0x6b   :  { %1466 = vmatpush.bf16.msra.mxu1 %v3504_v55  ;;  %1479 = vmatpush.bf16.msra.mxu3 %v3632_v60  ;;  %v3309_v38 = vld [vmem:[#allocation5 + $0x230] sm:$0xf0]  ;;  %v4593_v41 = vld [vmem:[#allocation5 + $0x424] sm:$0xf]  ;;  %v3712_v43 = vor.u32 %v4629_v33, %v3709_v34  ;;  %v4520_v26 = vld [vmem:[#allocation5 + $0x1d4] sm:$0xf0] }
  0x6c   :  { %1454 = vmatpush.bf16.msra.mxu0 %v3360_v5  ;;  %v3437_v40 = vld [vmem:[#allocation5 + $0x330] sm:$0xf0]  ;;  %v4625_v44 = vld [vmem:[#allocation5 + $0x524] sm:$0xf]  ;;  %v3312_v46 = vor.u32 %v4529_v35, %v3309_v38  ;;  %v3123_v28 = vld [vmem:[#allocation5 + $0xa8] sm:$0xf]  ;;  %v3268_v34 = vor.u32 %v4520_v26, %v3267_v25 }
  0x6d   :  { %v3565_v42 = vld [vmem:[#allocation5 + $0x430] sm:$0xf0]  ;;  %v3440_v47 = vor.u32 %v4561_v39, %v3437_v40  ;;  %v4525_v48 = vld [vmem:[#allocation5 + $0x204] sm:$0xf]  ;;  %v4548_v33 = vld [vmem:[#allocation5 + $0x2b4] sm:$0xf0] }
  0x6e   :  { %1492 = vmatpush.bf16.msrb.mxu2 %v3760_v4  ;;  %v3693_v45 = vld [vmem:[#allocation5 + $0x530] sm:$0xf0]  ;;  %v4557_v50 = vld [vmem:[#allocation5 + $0x304] sm:$0xf]  ;;  %v3568_v51 = vor.u32 %v4593_v41, %v3565_v42  ;;  %v3507_v35 = vld [vmem:[#allocation5 + $0x3a8] sm:$0xf] }
  0x6f   :  { %1467 = vmatpush.bf16.msra.mxu1 %v3488_v6  ;;  %1480 = vmatpush.bf16.msra.mxu3 %v3616_v11  ;;  %v3293_v49 = vld [vmem:[#allocation5 + $0x210] sm:$0xf0]  ;;  %v4589_v53 = vld [vmem:[#allocation5 + $0x404] sm:$0xf]  ;;  %v3696_v60 = vor.u32 %v4625_v44, %v3693_v45  ;;  %v3251_v39 = vld [vmem:[#allocation5 + $0x1a8] sm:$0xf] }
  0x70   :  { %1455 = vmatpush.bf16.msra.mxu0 %v3344_v18  ;;  %v3421_v52 = vld [vmem:[#allocation5 + $0x310] sm:$0xf0]  ;;  %v4653_v59 = vld [vmem:[#allocation5 + $0x604] sm:$0xf]  ;;  %v3296_v2 = vor.u32 %v4525_v48, %v3293_v49  ;;  %v3540_v18 = vor.u32 %v4588_v10, %v3539_v9  ;;  %v4516_v40 = vld [vmem:[#allocation5 + $0x1b4] sm:$0xf0] }
  0x71   :  { %v3549_v55 = vld [vmem:[#allocation5 + $0x410] sm:$0xf0]  ;;  %v3424_v3 = vor.u32 %v4557_v50, %v3421_v52  ;;  %v4621_v4 = vld [vmem:[#allocation5 + $0x504] sm:$0xf]  ;;  %v3107_v42 = vld [vmem:[#allocation5 + $0x88] sm:$0xf] }
  0x72   :  { %1493 = vmatpush.bf16.msrb.mxu2 %v3744_v17  ;;  %v3805_v62 = vld [vmem:[#allocation5 + $0x610] sm:$0xf0]  ;;  %v3552_v6 = vor.u32 %v4589_v53, %v3549_v55  ;;  %v4488_v17 = vld [vmem:[#allocation5 + $0xd4] sm:$0xf0]  ;;  %v3363_v45 = vld [vmem:[#allocation5 + $0x288] sm:$0xf] }
  0x73   :  { %1468 = vmatpush.bf16.msra.mxu1 %v3472_v19  ;;  %1481 = vmatpush.bf16.msra.mxu3 %v3600_v23  ;;  %v3677_v5 = vld [vmem:[#allocation5 + $0x510] sm:$0xf0]  ;;  %v3808_v11 = vor.u32 %v4653_v59, %v3805_v62  ;;  %v3395_v19 = vld [vmem:[#allocation5 + $0x2c8] sm:$0xf]  ;;  %v4584_v23 = vld [vmem:[#allocation5 + $0x3d4] sm:$0xf0]  ;;  %v3140_v24 = vor.u32 %v4488_v17, %v3139_v16 }
  0x74   :  { %1456 = vmatpush.bf16.msra.mxu0 %v3328_v30  ;;  %v3680_v15 = vor.u32 %v4621_v4, %v3677_v5  ;;  %v3396_v27 = vor.u32 %v4552_v20, %v3395_v19  ;;  %v3524_v30 = vor.u32 %v4584_v23, %v3523_v22  ;;  %v3491_v48 = vld [vmem:[#allocation5 + $0x388] sm:$0xf]  ;;  %v4576_v49 = vld [vmem:[#allocation5 + $0x394] sm:$0xf0] }
  0x75   :  { %v4512_v52 = vld [vmem:[#allocation5 + $0x194] sm:$0xf0]  ;;  %v3091_v55 = vld [vmem:[#allocation5 + $0x68] sm:$0xf]  ;;  %v3492_v58 = vor.u32 %v4576_v49, %v3491_v48  ;;  %v4490_v48 = vld [vmem:[#allocation5 + $0xec] sm:$0xf] }
  0x76   :  { %1494 = vmatpush.bf16.msrb.mxu2 %v3728_v29  ;;  %v4484_v29 = vld [vmem:[#allocation5 + $0xb4] sm:$0xf0]  ;;  %v3347_v59 = vld [vmem:[#allocation5 + $0x268] sm:$0xf]  ;;  %v3157_v49 = vld [vmem:[#allocation5 + $0xf8] sm:$0xf0] }
  0x77   :  { %1469 = vmatpush.bf16.msra.mxu1 %v3456_v31  ;;  %1482 = vmatpush.bf16.msra.mxu3 %v3584_v36  ;;  %v3379_v31 = vld [vmem:[#allocation5 + $0x2a8] sm:$0xf]  ;;  %v4580_v36 = vld [vmem:[#allocation5 + $0x3b4] sm:$0xf0]  ;;  %v3124_v38 = vor.u32 %v4484_v29, %v3123_v28 }
  0x78   :  { %1457 = vmatpush.bf16.msra.mxu0 %v3312_v46  ;;  %v3380_v41 = vor.u32 %v4548_v33, %v3379_v31  ;;  %v3508_v44 = vor.u32 %v4580_v36, %v3507_v35  ;;  %v4544_v46 = vld [vmem:[#allocation5 + $0x294] sm:$0xf0]  ;;  %v3475_v0 = vld [vmem:[#allocation5 + $0x368] sm:$0xf] }
  0x79   :  { %v3364_v53 = vor.u32 %v4544_v46, %v3363_v45  ;;  %v4476_v57 = vld [vmem:[#allocation5 + $0x74] sm:$0xf0]  ;;  %v3331_v10 = vld [vmem:[#allocation5 + $0x248] sm:$0xf] }
  0x7a   :  { %1495 = vmatpush.bf16.msrb.mxu2 %v3712_v43  ;;  %v4480_v43 = vld [vmem:[#allocation5 + $0x94] sm:$0xf0]  ;;  %v3459_v13 = vld [vmem:[#allocation5 + $0x348] sm:$0xf] }
  0x7b   :  { %1470 = vmatpush.bf16.msra.mxu1 %v3440_v47  ;;  %1483 = vmatpush.bf16.msra.mxu3 %v3568_v51  ;;  %v3252_v47 = vor.u32 %v4516_v40, %v3251_v39  ;;  %v3108_v50 = vor.u32 %v4480_v43, %v3107_v42  ;;  %v3235_v51 = vld [vmem:[#allocation5 + $0x188] sm:$0xf]  ;;  %v4572_v1 = vld [vmem:[#allocation5 + $0x374] sm:$0xf0] }
  0x7c   :  { %1458 = vmatpush.bf16.msra.mxu0 %v3296_v2  ;;  %v3236_v62 = vor.u32 %v4512_v52, %v3235_v51  ;;  %v3092_v2 = vor.u32 %v4476_v57, %v3091_v55  ;;  %v4508_v4 = vld [vmem:[#allocation5 + $0x174] sm:$0xf0]  ;;  %v3476_v9 = vor.u32 %v4572_v1, %v3475_v0  ;;  %v3203_v16 = vld [vmem:[#allocation5 + $0x148] sm:$0xf]  ;;  %v3160_v1 = vor.u32 %v4490_v48, %v3157_v49 }
  0x7d   :  { %v4504_v17 = vld [vmem:[#allocation5 + $0x154] sm:$0xf0]  ;;  %v3059_v19 = vld [vmem:[#allocation5 + $0x28] sm:$0xf] }
  0x7e   :  { %1496 = vmatpush.bf16.msrb.mxu2 %v3696_v60  ;;  %v4540_v60 = vld [vmem:[#allocation5 + $0x274] sm:$0xf0]  ;;  %v3315_v22 = vld [vmem:[#allocation5 + $0x228] sm:$0xf] }
  0x7f   :  { %1471 = vmatpush.bf16.msra.mxu1 %v3424_v3  ;;  %1484 = vmatpush.bf16.msra.mxu3 %v3552_v6  ;;  %v3219_v3 = vld [vmem:[#allocation5 + $0x168] sm:$0xf]  ;;  %v3348_v5 = vor.u32 %v4540_v60, %v3347_v59  ;;  %v4468_v20 = vld [vmem:[#allocation5 + $0x34] sm:$0xf0]  ;;  %v4522_v60 = vld [vmem:[#allocation5 + $0x1ec] sm:$0xf] }
  0x80   :  { %1542 = vmatpush.bf16.msrb.mxu0 %v3412_v14  ;;  %v3075_v6 = vld [vmem:[#allocation5 + $0x48] sm:$0xf]  ;;  %v3220_v12 = vor.u32 %v4508_v4, %v3219_v3  ;;  %v4568_v14 = vld [vmem:[#allocation5 + $0x354] sm:$0xf0]  ;;  %v4486_v3 = vld [vmem:[#allocation5 + $0xcc] sm:$0xf] }
  0x81   :  { %1459 = vmatmul.bf16.vlgmr.msra.gmra.mxu0 %v5076_v54  ;;  %v4532_v23 = vld [vmem:[#allocation5 + $0x234] sm:$0xf0]  ;;  %v3443_v25 = vld [vmem:[#allocation5 + $0x328] sm:$0xf]  ;;  %v3141_v4 = vld [vmem:[#allocation5 + $0xd8] sm:$0xf0] }
  0x82   :  { %1497 = vmatpush.bf16.msrb.mxu2 %v3680_v15  ;;  %1485 = vmatmul.bf16.vlgmr.msra.gmra.mxu3 %v5092_v32  ;;  %v4564_v26 = vld [vmem:[#allocation5 + $0x334] sm:$0xf0]  ;;  %v3187_v28 = vld [vmem:[#allocation5 + $0x128] sm:$0xf]  ;;  %v3316_v31 = vor.u32 %v4532_v23, %v3315_v22 }
  0x83   :  { %1516 = vmatpush.bf16.msrb.mxu1 %v3156_v7  ;;  %1510 = vmatpush.bf16.msrb.mxu3 %v3808_v11  ;;  %v4472_v7 = vld [vmem:[#allocation5 + $0x54] sm:$0xf0]  ;;  %v3444_v36 = vor.u32 %v4564_v26, %v3443_v25  ;;  %v3299_v39 = vld [vmem:[#allocation5 + $0x208] sm:$0xf]  ;;  %v3253_v25 = vld [vmem:[#allocation5 + $0x1b8] sm:$0xf0] }
  0x84   :  { %1472 = vmatmul.bf16.vlgmr.msra.gmra.mxu1 %v5080_v63  ;;  %1543 = vmatpush.bf16.msrb.mxu0 %v3396_v27  ;;  %v4536_v11 = vld [vmem:[#allocation5 + $0x254] sm:$0xf0]  ;;  %v3076_v15 = vor.u32 %v4472_v7, %v3075_v6  ;;  %v3060_v27 = vor.u32 %v4468_v20, %v3059_v19  ;;  %v3795_v52 = vld [vmem:[#allocation5 + $0x5e8] sm:$0xf] }
  0x85   :  { %1498 = vmatmul.bf16.vlgmr.msrb.gmra.mxu2 %v5094_v37  ;;  %v4500_v29 = vld [vmem:[#allocation5 + $0x134] sm:$0xf0]  ;;  %v3651_v55 = vld [vmem:[#allocation5 + $0x4c8] sm:$0xf] }
  0x86   :  { %1555 = vmatpush.bf16.msra.mxu2 %v3540_v18  ;;  %v3332_v18 = vor.u32 %v4536_v11, %v3331_v10  ;;  %v4464_v33 = vld [vmem:[#allocation5 + $0x14] sm:$0xf0]  ;;  %v3188_v42 = vor.u32 %v4500_v29, %v3187_v28  ;;  %v3779_v7 = vld [vmem:[#allocation5 + $0x5c8] sm:$0xf]  ;;  %v4478_v28 = vld [vmem:[#allocation5 + $0x8c] sm:$0xf] }
  0x87   :  { %1529 = vmatpush.bf16.msra.mxu3 %v3284_v21  ;;  %1517 = vmatpush.bf16.msrb.mxu1 %v3140_v24  ;;  %v3460_v21 = vor.u32 %v4568_v14, %v3459_v13  ;;  %v3204_v24 = vor.u32 %v4504_v17, %v3203_v16  ;;  %v4620_v35 = vld [vmem:[#allocation5 + $0x4f4] sm:$0xf0]  ;;  %v3635_v10 = vld [vmem:[#allocation5 + $0x4a8] sm:$0xf]  ;;  %v3269_v13 = vld [vmem:[#allocation5 + $0x1d8] sm:$0xf0]  ;;  %v3144_v14 = vor.u32 %v4486_v3, %v3141_v4 }
  0x88   :  { %1544 = vmatpush.bf16.msrb.mxu0 %v3380_v41  ;;  %v4528_v40 = vld [vmem:[#allocation5 + $0x214] sm:$0xf0]  ;;  %v3427_v41 = vld [vmem:[#allocation5 + $0x308] sm:$0xf]  ;;  %v4482_v16 = vld [vmem:[#allocation5 + $0xac] sm:$0xf] }
  0x89   :  { %v4560_v43 = vld [vmem:[#allocation5 + $0x314] sm:$0xf0]  ;;  %v3300_v51 = vor.u32 %v4528_v40, %v3299_v39  ;;  %v3125_v17 = vld [vmem:[#allocation5 + $0xb8] sm:$0xf0]  ;;  %v3763_v20 = vld [vmem:[#allocation5 + $0x5a8] sm:$0xf] }
  0x8a   :  { %1556 = vmatpush.bf16.msra.mxu2 %v3524_v30  ;;  %v3043_v30 = vld [vmem:[#allocation5 + $0x8] sm:$0xf]  ;;  %v4656_v45 = vld [vmem:[#allocation5 + $0x614] sm:$0xf0]  ;;  %v3428_v57 = vor.u32 %v4560_v43, %v3427_v41  ;;  %v3128_v26 = vor.u32 %v4482_v16, %v3125_v17  ;;  %v3109_v29 = vld [vmem:[#allocation5 + $0x98] sm:$0xf0] }
  0x8b   :  { %1530 = vmatpush.bf16.msra.mxu3 %v3268_v34  ;;  %1518 = vmatpush.bf16.msrb.mxu1 %v3124_v38  ;;  %v3667_v34 = vld [vmem:[#allocation5 + $0x4e8] sm:$0xf]  ;;  %v3044_v46 = vor.u32 %v4464_v33, %v3043_v30  ;;  %v4612_v11 = vld [vmem:[#allocation5 + $0x4b4] sm:$0xf0]  ;;  %v3237_v39 = vld [vmem:[#allocation5 + $0x198] sm:$0xf0]  ;;  %v3112_v40 = vor.u32 %v4478_v28, %v3109_v29 }
  0x8c   :  { %1545 = vmatpush.bf16.msrb.mxu0 %v3364_v53  ;;  %v3171_v38 = vld [vmem:[#allocation5 + $0x108] sm:$0xf]  ;;  %v4652_v53 = vld [vmem:[#allocation5 + $0x5f4] sm:$0xf0]  ;;  %v3093_v43 = vld [vmem:[#allocation5 + $0x78] sm:$0xf0] }
  0x8d   :  { %v3619_v22 = vld [vmem:[#allocation5 + $0x488] sm:$0xf]  ;;  %v4608_v23 = vld [vmem:[#allocation5 + $0x494] sm:$0xf0]  ;;  %v3205_v3 = vld [vmem:[#allocation5 + $0x158] sm:$0xf0] }
  0x8e   :  { %1557 = vmatpush.bf16.msra.mxu2 %v3508_v44  ;;  %v3811_v44 = vld [vmem:[#allocation5 + $0x608] sm:$0xf]  ;;  %v3620_v30 = vor.u32 %v4608_v23, %v3619_v22  ;;  %v4600_v49 = vld [vmem:[#allocation5 + $0x454] sm:$0xf0]  ;;  %v3189_v16 = vld [vmem:[#allocation5 + $0x138] sm:$0xf0] }
  0x8f   :  { %1531 = vmatpush.bf16.msra.mxu3 %v3252_v47  ;;  %1519 = vmatpush.bf16.msrb.mxu1 %v3108_v50  ;;  %v4496_v47 = vld [vmem:[#allocation5 + $0x114] sm:$0xf0]  ;;  %v3668_v50 = vor.u32 %v4620_v35, %v3667_v34  ;;  %v3812_v59 = vor.u32 %v4656_v45, %v3811_v44  ;;  %v3747_v33 = vld [vmem:[#allocation5 + $0x588] sm:$0xf]  ;;  %v4462_v22 = vld [vmem:[#allocation5 + $0xc] sm:$0xf] }
  0x90   :  { %1546 = vmatpush.bf16.msrb.mxu0 %v3348_v5  ;;  %v3172_v0 = vor.u32 %v4496_v47, %v3171_v38  ;;  %v4640_v34 = vld [vmem:[#allocation5 + $0x594] sm:$0xf0]  ;;  %v3603_v35 = vld [vmem:[#allocation5 + $0x468] sm:$0xf]  ;;  %v4510_v38 = vld [vmem:[#allocation5 + $0x18c] sm:$0xf] }
  0x91   :  { %v3748_v41 = vor.u32 %v4640_v34, %v3747_v33  ;;  %v3240_v45 = vor.u32 %v4510_v38, %v3237_v39  ;;  %v4636_v47 = vld [vmem:[#allocation5 + $0x574] sm:$0xf0]  ;;  %v3587_v48 = vld [vmem:[#allocation5 + $0x448] sm:$0xf]  ;;  %v3045_v23 = vld [vmem:[#allocation5 + $0x18] sm:$0xf0] }
  0x92   :  { %1558 = vmatpush.bf16.msra.mxu2 %v3492_v58  ;;  %3818 = vmatmul.msk.bf16.vlgmr.msrb.gmra.mxu3 %vm1330_vm0, %v5088_v61  ;;  %v4616_v58 = vld [vmem:[#allocation5 + $0x4d4] sm:$0xf0]  ;;  %v3541_v28 = vld [vmem:[#allocation5 + $0x3f8] sm:$0xf0]  ;;  %v4550_v33 = vld [vmem:[#allocation5 + $0x2cc] sm:$0xf]  ;;  %v3048_v34 = vor.u32 %v4462_v22, %v3045_v23 }
  0x93   :  { %1532 = vmatpush.bf16.msra.mxu3 %v3236_v62  ;;  %1520 = vmatpush.bf16.msrb.mxu1 %v3092_v2  ;;  %v3285_v62 = vld [vmem:[#allocation5 + $0x1f8] sm:$0xf0]  ;;  %v3796_v2 = vor.u32 %v4652_v53, %v3795_v52  ;;  %v3652_v5 = vor.u32 %v4616_v58, %v3651_v55  ;;  %v4470_v55 = vld [vmem:[#allocation5 + $0x4c] sm:$0xf]  ;;  %v3588_v58 = vor.u32 %v4600_v49, %v3587_v48 }
  0x94   :  { %1547 = vmatpush.bf16.msrb.mxu0 %v3332_v18  ;;  %v3288_v6 = vor.u32 %v4522_v60, %v3285_v62  ;;  %v3636_v18 = vor.u32 %v4612_v11, %v3635_v10  ;;  %v3715_v60 = vld [vmem:[#allocation5 + $0x548] sm:$0xf]  ;;  %v4632_v62 = vld [vmem:[#allocation5 + $0x554] sm:$0xf0]  ;;  %v3173_v38 = vld [vmem:[#allocation5 + $0x118] sm:$0xf0] }
  0x95   :  { %v3699_v11 = vld [vmem:[#allocation5 + $0x528] sm:$0xf]  ;;  %v4614_v48 = vld [vmem:[#allocation5 + $0x4cc] sm:$0xf]  ;;  %v3653_v49 = vld [vmem:[#allocation5 + $0x4d8] sm:$0xf0] }
  0x96   :  { %1559 = vmatpush.bf16.msra.mxu2 %v3476_v9  ;;  %v4648_v9 = vld [vmem:[#allocation5 + $0x5d4] sm:$0xf0]  ;;  %v4570_v22 = vld [vmem:[#allocation5 + $0x36c] sm:$0xf] }
  0x97   :  { %1533 = vmatpush.bf16.msra.mxu3 %v3220_v12  ;;  %1521 = vmatpush.bf16.msrb.mxu1 %v3076_v15  ;;  %v4518_v12 = vld [vmem:[#allocation5 + $0x1cc] sm:$0xf]  ;;  %v3780_v15 = vor.u32 %v4648_v9, %v3779_v7  ;;  %v3061_v7 = vld [vmem:[#allocation5 + $0x38] sm:$0xf0] }
  0x98   :  { %1548 = vmatpush.bf16.msrb.mxu0 %v3316_v31  ;;  %v3272_v19 = vor.u32 %v4518_v12, %v3269_v13  ;;  %v4628_v12 = vld [vmem:[#allocation5 + $0x534] sm:$0xf0]  ;;  %v3555_v13 = vld [vmem:[#allocation5 + $0x408] sm:$0xf] }
  0x9a   :  { %1560 = vmatpush.bf16.msra.mxu2 %v3460_v21  ;;  %v4644_v21 = vld [vmem:[#allocation5 + $0x5b4] sm:$0xf0] }
  0x9b   :  { %1534 = vmatpush.bf16.msra.mxu3 %v3204_v24  ;;  %1522 = vmatpush.bf16.msrb.mxu1 %v3060_v27  ;;  %v4514_v24 = vld [vmem:[#allocation5 + $0x1ac] sm:$0xf]  ;;  %v3764_v27 = vor.u32 %v4644_v21, %v3763_v20  ;;  %v3700_v20 = vor.u32 %v4628_v12, %v3699_v11  ;;  %v3683_v21 = vld [vmem:[#allocation5 + $0x508] sm:$0xf]  ;;  %v3493_v12 = vld [vmem:[#allocation5 + $0x398] sm:$0xf0] }
  0x9c   :  { %1549 = vmatpush.bf16.msrb.mxu0 %v3300_v51  ;;  %v3256_v31 = vor.u32 %v4514_v24, %v3253_v25  ;;  %v3221_v51 = vld [vmem:[#allocation5 + $0x178] sm:$0xf0] }
  0x9e   :  { %1561 = vmatpush.bf16.msra.mxu2 %v3444_v36  ;;  %v4604_v36 = vld [vmem:[#allocation5 + $0x474] sm:$0xf0] }
  0x9f   :  { %1535 = vmatpush.bf16.msra.mxu3 %v3188_v42  ;;  %1523 = vmatpush.bf16.msrb.mxu1 %v3044_v46  ;;  %v4474_v42 = vld [vmem:[#allocation5 + $0x6c] sm:$0xf]  ;;  %v3604_v44 = vor.u32 %v4604_v36, %v3603_v35  ;;  %v3731_v46 = vld [vmem:[#allocation5 + $0x568] sm:$0xf]  ;;  %v3397_v35 = vld [vmem:[#allocation5 + $0x2d8] sm:$0xf0] }
  0xa0   :  { %1601 = vmatpush.bf16.msra.mxu0 %v3812_v59  ;;  %v3096_v52 = vor.u32 %v4474_v42, %v3093_v43  ;;  %v3732_v53 = vor.u32 %v4636_v47, %v3731_v46  ;;  %v4494_v36 = vld [vmem:[#allocation5 + $0x10c] sm:$0xf]  ;;  %v3525_v47 = vld [vmem:[#allocation5 + $0x3d8] sm:$0xf0] }
  0xa1   :  { %1550 = vmatmul.bf16.vlgmr.msrb.gmra.mxu0 %v5076_v54  ;;  %v3176_v46 = vor.u32 %v4494_v36, %v3173_v38  ;;  %v4566_v36 = vld [vmem:[#allocation5 + $0x34c] sm:$0xf] }
  0xa2   :  { %1562 = vmatpush.bf16.msra.mxu2 %v3428_v57  ;;  %1524 = vmatmul.bf16.vlgmr.msrb.gmra.mxu1 %v5078_v56  ;;  %v3077_v57 = vld [vmem:[#allocation5 + $0x58] sm:$0xf0] }
  0xa3   :  { %1568 = vmatpush.bf16.msra.mxu1 %v3668_v50  ;;  %1536 = vmatpush.bf16.msra.mxu3 %v3172_v0  ;;  %v4506_v50 = vld [vmem:[#allocation5 + $0x16c] sm:$0xf]  ;;  %v3571_v0 = vld [vmem:[#allocation5 + $0x428] sm:$0xf]  ;;  %v3080_v4 = vor.u32 %v4470_v55, %v3077_v57  ;;  %v3781_v55 = vld [vmem:[#allocation5 + $0x5d8] sm:$0xf0] }
  0xa4   :  { %1620 = vmatpush.bf16.msrb.mxu0 %v3288_v6  ;;  %v3224_v59 = vor.u32 %v4506_v50, %v3221_v51  ;;  %v4466_v6 = vld [vmem:[#allocation5 + $0x2c] sm:$0xf] }
  0xa5   :  { %1563 = vmatmul.bf16.vlgmr.msra.gmra.mxu2 %v5080_v63  ;;  %v3064_v17 = vor.u32 %v4466_v6, %v3061_v7  ;;  %v4546_v51 = vld [vmem:[#allocation5 + $0x2ac] sm:$0xf]  ;;  %v3765_v6 = vld [vmem:[#allocation5 + $0x5b8] sm:$0xf0] }
  0xa6   :  { %1607 = vmatpush.bf16.msrb.mxu2 %v3160_v1  ;;  %1537 = vmatmul.bf16.vlgmr.msra.gmra.mxu3 %v5084_v8  ;;  %v4596_v1 = vld [vmem:[#allocation5 + $0x434] sm:$0xf0] }
  0xa7   :  { %1581 = vmatpush.bf16.msrb.mxu3 %v3796_v2  ;;  %1569 = vmatpush.bf16.msra.mxu1 %v3652_v5  ;;  %v4502_v2 = vld [vmem:[#allocation5 + $0x14c] sm:$0xf]  ;;  %v3716_v5 = vor.u32 %v4632_v62, %v3715_v60  ;;  %v3572_v9 = vor.u32 %v4596_v1, %v3571_v0  ;;  %v3509_v62 = vld [vmem:[#allocation5 + $0x3b8] sm:$0xf0] }
  0xa8   :  { %1621 = vmatpush.bf16.msrb.mxu0 %v3272_v19  ;;  %v3208_v10 = vor.u32 %v4502_v2, %v3205_v3  ;;  %v3413_v19 = vld [vmem:[#allocation5 + $0x2f8] sm:$0xf0]  ;;  %v4610_v0 = vld [vmem:[#allocation5 + $0x4ac] sm:$0xf] }
  0xa9   :  { %v3637_v1 = vld [vmem:[#allocation5 + $0x4b8] sm:$0xf0]  ;;  %v4542_v3 = vld [vmem:[#allocation5 + $0x28c] sm:$0xf] }
  0xaa   :  { %1608 = vmatpush.bf16.msrb.mxu2 %v3144_v14  ;;  %v4592_v14 = vld [vmem:[#allocation5 + $0x414] sm:$0xf0] }
  0xab   :  { %1582 = vmatpush.bf16.msrb.mxu3 %v3780_v15  ;;  %1570 = vmatpush.bf16.msra.mxu1 %v3636_v18  ;;  %v4498_v15 = vld [vmem:[#allocation5 + $0x12c] sm:$0xf]  ;;  %v3556_v24 = vor.u32 %v4592_v14, %v3555_v13  ;;  %v3621_v14 = vld [vmem:[#allocation5 + $0x498] sm:$0xf0] }
  0xac   :  { %1622 = vmatpush.bf16.msrb.mxu0 %v3256_v31  ;;  %v4554_v18 = vld [vmem:[#allocation5 + $0x2ec] sm:$0xf]  ;;  %v3192_v25 = vor.u32 %v4498_v15, %v3189_v16  ;;  %v3669_v31 = vld [vmem:[#allocation5 + $0x4f8] sm:$0xf0] }
  0xad   :  { %v3416_v29 = vor.u32 %v4554_v18, %v3413_v19  ;;  %v4606_v13 = vld [vmem:[#allocation5 + $0x48c] sm:$0xf]  ;;  %v3749_v19 = vld [vmem:[#allocation5 + $0x598] sm:$0xf0] }
  0xae   :  { %1609 = vmatpush.bf16.msrb.mxu2 %v3128_v26  ;;  %v4624_v26 = vld [vmem:[#allocation5 + $0x514] sm:$0xf0]  ;;  %v4538_v16 = vld [vmem:[#allocation5 + $0x26c] sm:$0xf] }
  0xaf   :  { %1583 = vmatpush.bf16.msrb.mxu3 %v3764_v27  ;;  %1571 = vmatpush.bf16.msra.mxu1 %v3620_v30  ;;  %v4586_v27 = vld [vmem:[#allocation5 + $0x3ec] sm:$0xf]  ;;  %v3684_v39 = vor.u32 %v4624_v26, %v3683_v21  ;;  %v3624_v21 = vor.u32 %v4606_v13, %v3621_v14  ;;  %v3605_v26 = vld [vmem:[#allocation5 + $0x478] sm:$0xf0] }
  0xb0   :  { %1623 = vmatpush.bf16.msrb.mxu0 %v3240_v45  ;;  %v4618_v30 = vld [vmem:[#allocation5 + $0x4ec] sm:$0xf]  ;;  %v3544_v42 = vor.u32 %v4586_v27, %v3541_v28  ;;  %v3400_v45 = vor.u32 %v4550_v33, %v3397_v35  ;;  %v3557_v13 = vld [vmem:[#allocation5 + $0x418] sm:$0xf0] }
  0xb1   :  { %3819 = vmatmul.msk.bf16.vlgmr.msra.gmra.mxu0 %vm1330_vm0, %v5088_v61  ;;  %v3672_v43 = vor.u32 %v4618_v30, %v3669_v31  ;;  %v4534_v28 = vld [vmem:[#allocation5 + $0x24c] sm:$0xf]  ;;  %v3733_v31 = vld [vmem:[#allocation5 + $0x578] sm:$0xf0] }
  0xb2   :  { %1610 = vmatpush.bf16.msrb.mxu2 %v3112_v40  ;;  %v4650_v40 = vld [vmem:[#allocation5 + $0x5ec] sm:$0xf] }
  0xb3   :  { %1584 = vmatpush.bf16.msrb.mxu3 %v3748_v41  ;;  %1572 = vmatpush.bf16.msra.mxu1 %v3604_v44  ;;  %v3797_v41 = vld [vmem:[#allocation5 + $0x5f8] sm:$0xf0]  ;;  %v4582_v44 = vld [vmem:[#allocation5 + $0x3cc] sm:$0xf] }
  0xb4   :  { %1624 = vmatpush.bf16.msrb.mxu0 %v3224_v59  ;;  %v3800_v50 = vor.u32 %v4650_v40, %v3797_v41  ;;  %v3528_v57 = vor.u32 %v4582_v44, %v3525_v47  ;;  %v4578_v59 = vld [vmem:[#allocation5 + $0x3ac] sm:$0xf]  ;;  %v3461_v40 = vld [vmem:[#allocation5 + $0x358] sm:$0xf0] }
  0xb5   :  { %v3512_v7 = vor.u32 %v4578_v59, %v3509_v62  ;;  %v4634_v30 = vld [vmem:[#allocation5 + $0x56c] sm:$0xf] }
  0xb6   :  { %1611 = vmatpush.bf16.msrb.mxu2 %v3096_v52  ;;  %v3381_v52 = vld [vmem:[#allocation5 + $0x2b8] sm:$0xf0]  ;;  %v4598_v41 = vld [vmem:[#allocation5 + $0x44c] sm:$0xf] }
  0xb7   :  { %1585 = vmatpush.bf16.msrb.mxu3 %v3732_v53  ;;  %1573 = vmatpush.bf16.msra.mxu1 %v3588_v58  ;;  %v4646_v53 = vld [vmem:[#allocation5 + $0x5cc] sm:$0xf]  ;;  %v3656_v58 = vor.u32 %v4614_v48, %v3653_v49  ;;  %v3384_v60 = vor.u32 %v4546_v51, %v3381_v52  ;;  %v3717_v48 = vld [vmem:[#allocation5 + $0x558] sm:$0xf0]  ;;  %v3464_v49 = vor.u32 %v4566_v36, %v3461_v40  ;;  %v4679_v40 = vld [vmem:[#allocation8 + $0xac] sm:$0xf0] }
  0xb8   :  { %1625 = vmatpush.bf16.msrb.mxu0 %v3208_v10  ;;  %v3784_v2 = vor.u32 %v4646_v53, %v3781_v55  ;;  %v4574_v10 = vld [vmem:[#allocation5 + $0x38c] sm:$0xf]  ;;  %v3445_v53 = vld [vmem:[#allocation5 + $0x338] sm:$0xf0] }
  0xb9   :  { %v4530_v44 = vld [vmem:[#allocation5 + $0x22c] sm:$0xf] }
  0xba   :  { %1612 = vmatpush.bf16.msrb.mxu2 %v3080_v4  ;;  %v3365_v4 = vld [vmem:[#allocation5 + $0x298] sm:$0xf0]  ;;  %v4630_v47 = vld [vmem:[#allocation5 + $0x54c] sm:$0xf] }
  0xbb   :  { %1586 = vmatpush.bf16.msrb.mxu3 %v3716_v5  ;;  %1574 = vmatpush.bf16.msra.mxu1 %v3572_v9  ;;  %v4642_v5 = vld [vmem:[#allocation5 + $0x5ac] sm:$0xf]  ;;  %v3640_v9 = vor.u32 %v4610_v0, %v3637_v1  ;;  %v3368_v11 = vor.u32 %v4542_v3, %v3365_v4  ;;  %v3701_v1 = vld [vmem:[#allocation5 + $0x538] sm:$0xf0]  ;;  %v5124_v4 = vld [vmem:[#allocation7] sm:$0xf] }
  0xbc   :  { %1626 = vmatpush.bf16.msrb.mxu0 %v3192_v25  ;;  %v3768_v15 = vor.u32 %v4642_v5, %v3765_v6  ;;  %v4602_v25 = vld [vmem:[#allocation5 + $0x46c] sm:$0xf]  ;;  %v3813_v3 = vld [vmem:[#allocation5 + $0x618] sm:$0xf0] }
  0xbd   :  { %v3608_v35 = vor.u32 %v4602_v25, %v3605_v26  ;;  %v4562_v51 = vld [vmem:[#allocation5 + $0x32c] sm:$0xf] }
  0xbe   :  { %1613 = vmatpush.bf16.msrb.mxu2 %v3064_v17  ;;  %v3349_v17 = vld [vmem:[#allocation5 + $0x278] sm:$0xf0]  ;;  %v4594_v55 = vld [vmem:[#allocation5 + $0x42c] sm:$0xf]  ;;  %v3448_v6 = vor.u32 %v4562_v51, %v3445_v53  ;;  %v4671_v53 = vld [vmem:[#allocation8 + $0x6c] sm:$0xf0] }
  0xbf   :  { %1587 = vmatpush.bf16.msrb.mxu3 %v3700_v20  ;;  %1575 = vmatpush.bf16.msra.mxu1 %v3556_v24  ;;  %v3496_v20 = vor.u32 %v4574_v10, %v3493_v12  ;;  %v3352_v23 = vor.u32 %v4538_v16, %v3349_v17  ;;  %v3477_v24 = vld [vmem:[#allocation5 + $0x378] sm:$0xf0]  ;;  %v4526_v59 = vld [vmem:[#allocation5 + $0x20c] sm:$0xf]  ;;  %v3935_v16 = vld [vmem:[#allocation8 + $0xe0] sm:$0xf] }
  0xc0   :  { %1627 = vmatpush.bf16.msrb.mxu0 %v3176_v46  ;;  %v4626_v62 = vld [vmem:[#allocation5 + $0x52c] sm:$0xf]  ;;  %v4687_v17 = vld [vmem:[#allocation8 + $0xec] sm:$0xf0] }
  0xc1   :  { %v4590_v12 = vld [vmem:[#allocation5 + $0x40c] sm:$0xf]  ;;  %v3936_v26 = vor.u32 %v4687_v17, %v3935_v16  ;;  %v4659_v16 = vld [vmem:[#allocation8 + $0xc] sm:$0xf0] }
  0xc2   :  { %1614 = vmatpush.bf16.msrb.mxu2 %v3048_v34  ;;  %1576 = vmatmul.bf16.vlgmr.msra.gmra.mxu1 %v5092_v32  ;;  %v5116_v18 = vpop.f32.mrf.mxu0  ;;  %v3480_v34 = vor.u32 %v4570_v22, %v3477_v24  ;;  %v4719_v22 = vld [vmem:[#allocation8 + $0x1ec] sm:$0xf0]  ;;  %v3560_v25 = vor.u32 %v4590_v12, %v3557_v13  ;;  %v3967_v12 = vld [vmem:[#allocation8 + $0x120] sm:$0xf] }
  0xc3   :  { %1633 = vmatpush.bf16.msrb.mxu1 %v3416_v29  ;;  %1588 = vmatpush.bf16.msrb.mxu3 %v3684_v39  ;;  %v3333_v29 = vld [vmem:[#allocation5 + $0x258] sm:$0xf0]  ;;  %v4695_v13 = vld [vmem:[#allocation8 + $0x12c] sm:$0xf0] }
  0xc4   :  { %1672 = vmatpush.bf16.msra.mxu0 %v3800_v50  ;;  %v3336_v38 = vor.u32 %v4534_v28, %v3333_v29  ;;  %v3919_v28 = vld [vmem:[#allocation8 + $0xc0] sm:$0xf]  ;;  %v4683_v29 = vld [vmem:[#allocation8 + $0xcc] sm:$0xf0] }
  0xc5   :  { %1615 = vmatmul.bf16.vlgmr.msrb.gmra.mxu2 %v5078_v56  ;;  %1628 = vmatmul.bf16.vlgmr.msrb.gmra.mxu0 %v5084_v8  ;;  %v4638_v56 = vld [vmem:[#allocation5 + $0x58c] sm:$0xf]  ;;  %v5118_v27 = vpop.f32.mrf.mxu1  ;;  %v3920_v36 = vor.u32 %v4683_v29, %v3919_v28  ;;  %v4065_v28 = vld [vmem:[#allocation8 + $0x1f0] sm:$0xf0] }
  0xc6   :  { %1659 = vmatpush.bf16.msra.mxu2 %v3672_v43  ;;  %1589 = vmatmul.bf16.vlgmr.msrb.gmra.mxu3 %v5094_v37  ;;  %v3752_v8 = vor.u32 %v4638_v56, %v3749_v19  ;;  %v3736_v43 = vor.u32 %v4634_v30, %v3733_v31  ;;  %v4622_v56 = vld [vmem:[#allocation5 + $0x50c] sm:$0xf]  ;;  %v4047_v31 = vld [vmem:[#allocation8 + $0x1c0] sm:$0xf] }
  0xc7   :  { %1646 = vmatpush.bf16.msra.mxu3 %v3544_v42  ;;  %1634 = vmatpush.bf16.msrb.mxu1 %v3400_v45  ;;  %v3589_v42 = vld [vmem:[#allocation5 + $0x458] sm:$0xf0] }
  0xc8   :  { %1673 = vmatpush.bf16.msra.mxu0 %v3784_v2  ;;  %v5120_v33 = vpop.f32.mrf.mxu2  ;;  %v3317_v45 = vld [vmem:[#allocation5 + $0x238] sm:$0xf0]  ;;  %v3592_v50 = vor.u32 %v4598_v41, %v3589_v42  ;;  %v4654_v2 = vld [vmem:[#allocation5 + $0x60c] sm:$0xf]  ;;  %v4031_v42 = vld [vmem:[#allocation8 + $0x1a0] sm:$0xf] }
  0xc9   :  { %v5122_v39 = vpop.f32.mrf.mxu3  ;;  %v3320_v52 = vor.u32 %v4530_v44, %v3317_v45  ;;  %v3816_v19 = vor.u32 %v4654_v2, %v3813_v3  ;;  %v3887_v45 = vld [vmem:[#allocation8 + $0x80] sm:$0xf]  ;;  %v4699_v3 = vld [vmem:[#allocation8 + $0x14c] sm:$0xf0] }
  0xca   :  { %1660 = vmatpush.bf16.msra.mxu2 %v3656_v58  ;;  %v1345_v46 = vpop.f32.mrf.mxu0  ;;  %v3720_v58 = vor.u32 %v4630_v47, %v3717_v48  ;;  %v3983_v2 = vld [vmem:[#allocation8 + $0x140] sm:$0xf] }
  0xcb   :  { %1647 = vmatpush.bf16.msra.mxu3 %v3528_v57  ;;  %1635 = vmatpush.bf16.msrb.mxu1 %v3384_v60  ;;  %v3573_v57 = vld [vmem:[#allocation5 + $0x438] sm:$0xf0]  ;;  %v4675_v46 = vld [vmem:[#allocation8 + $0x8c] sm:$0xf0] }
  0xcc   :  { %1674 = vmatpush.bf16.msra.mxu0 %v3768_v15  ;;  %v3301_v60 = vld [vmem:[#allocation5 + $0x218] sm:$0xf0]  ;;  %v3704_v15 = vor.u32 %v4626_v62, %v3701_v1  ;;  %v3855_v62 = vld [vmem:[#allocation8 + $0x40] sm:$0xf] }
  0xcd   :  { %v1358_v0 = vpop.f32.mrf.mxu1  ;;  %v3304_v10 = vor.u32 %v4526_v59, %v3301_v60 }
  0xce   :  { %1661 = vmatpush.bf16.msra.mxu2 %v3640_v9  ;;  %v4558_v9 = vld [vmem:[#allocation5 + $0x30c] sm:$0xf]  ;;  %v4667_v0 = vld [vmem:[#allocation8 + $0x4c] sm:$0xf0] }
  0xcf   :  { %1648 = vmatpush.bf16.msra.mxu3 %v3512_v7  ;;  %1636 = vmatpush.bf16.msrb.mxu1 %v3368_v11  ;;  %v3576_v7 = vor.u32 %v4594_v55, %v3573_v57  ;;  %v3429_v11 = vld [vmem:[#allocation5 + $0x318] sm:$0xf0]  ;;  %v3999_v55 = vld [vmem:[#allocation8 + $0x160] sm:$0xf]  ;;  %v4703_v57 = vld [vmem:[#allocation8 + $0x16c] sm:$0xf0] }
  0xd0   :  { %1675 = vmatpush.bf16.msra.mxu0 %v3752_v8  ;;  %v1371_v5 = vpop.f32.mrf.mxu2  ;;  %v3432_v24 = vor.u32 %v4558_v9, %v3429_v11  ;;  %v4000_v1 = vor.u32 %v4703_v57, %v3999_v55  ;;  %v3839_v9 = vld [vmem:[#allocation8 + $0x20] sm:$0xf]  ;;  %v3984_v11 = vor.u32 %v4699_v3, %v3983_v2  ;;  %v4673_v55 = vld [vmem:[#allocation8 + $0x84] sm:$0xf]  ;;  %v3889_v57 = vld [vmem:[#allocation8 + $0x90] sm:$0xf0] }
  0xd1   :  { %v1384_v14 = vpop.f32.mrf.mxu3  ;;  %v4735_v2 = vld [vmem:[#allocation8 + $0x26c] sm:$0xf0]  ;;  %v343_v3 = vperm.slane %v5124_v4, 1 }
  0xd2   :  { %1662 = vmatpush.bf16.msra.mxu2 %v3624_v21  ;;  %v4063_v21 = vld [vmem:[#allocation8 + $0x1e0] sm:$0xf] }
  0xd3   :  { %1649 = vmatpush.bf16.msra.mxu3 %v3496_v20  ;;  %1637 = vmatpush.bf16.msrb.mxu1 %v3352_v23  ;;  %v3685_v20 = vld [vmem:[#allocation5 + $0x518] sm:$0xf0]  ;;  %v342_v23 = vperm.slane %v5124_v4, 0  ;;  %v4064_v30 = vor.u32 %v4719_v22, %v4063_v21  ;;  %v4751_v21 = vld [vmem:[#allocation8 + $0x2ec] sm:$0xf0] }
  0xd4   :  { %1676 = vmatpush.bf16.msra.mxu0 %v3736_v43  ;;  %v3688_v8 = vor.u32 %v4622_v56, %v3685_v20  ;;  %v4711_v43 = vld [vmem:[#allocation8 + $0x1ac] sm:$0xf0]  ;;  %v4191_v20 = vld [vmem:[#allocation8 + $0x2e0] sm:$0xf] }
  0xd5   :  { %v4032_v47 = vor.u32 %v4711_v43, %v4031_v42  ;;  %v4713_v43 = vld [vmem:[#allocation8 + $0x1c4] sm:$0xf] }
  0xd6   :  { %1663 = vmatpush.bf16.msra.mxu2 %v3608_v35  ;;  %v1344_v35 = vadd.f32 %v5116_v18, %v342_v23  ;;  %v3937_v23 = vld [vmem:[#allocation8 + $0xf0] sm:$0xf0] }
  0xd7   :  { %1650 = vmatpush.bf16.msra.mxu3 %v3480_v34  ;;  %1638 = vmatpush.bf16.msrb.mxu1 %v3336_v38  ;;  %v4715_v34 = vld [vmem:[#allocation8 + $0x1cc] sm:$0xf0]  ;;  %v3903_v38 = vld [vmem:[#allocation8 + $0xa0] sm:$0xf] }
  0xd8   :  { %1677 = vmatpush.bf16.msra.mxu0 %v3720_v58  ;;  %v4048_v41 = vor.u32 %v4715_v34, %v4047_v31  ;;  %v1357_v44 = vadd.f32 %v5118_v27, %v1344_v35  ;;  %v1421_v18 = vpop.f32.mrf.mxu2  ;;  %v3871_v27 = vld [vmem:[#allocation8 + $0x60] sm:$0xf] }
  0xd9   :  { %v3872_v59 = vor.u32 %v4671_v53, %v3871_v27  ;;  %v4175_v35 = vld [vmem:[#allocation8 + $0x2c0] sm:$0xf] }
  0xda   :  { %1664 = vmatpush.bf16.msra.mxu2 %v3592_v50  ;;  %v4707_v50 = vld [vmem:[#allocation8 + $0x18c] sm:$0xf0]  ;;  %v4143_v53 = vld [vmem:[#allocation8 + $0x280] sm:$0xf] }
  0xdb   :  { %1651 = vmatpush.bf16.msra.mxu3 %v3464_v49  ;;  %1639 = vmatpush.bf16.msrb.mxu1 %v3320_v52  ;;  %v4015_v49 = vld [vmem:[#allocation8 + $0x180] sm:$0xf]  ;;  %v3888_v52 = vor.u32 %v4675_v46, %v3887_v45 }
  0xdc   :  { %1678 = vmatpush.bf16.msra.mxu0 %v3704_v15  ;;  %v3823_v15 = vld [vmem:[#allocation8] sm:$0xf] }
  0xdd   :  { %v3824_v29 = vor.u32 %v4659_v16, %v3823_v15  ;;  %v4159_v46 = vld [vmem:[#allocation8 + $0x2a0] sm:$0xf]  ;;  %v4665_v16 = vld [vmem:[#allocation8 + $0x44] sm:$0xf] }
  0xde   :  { %1665 = vmatpush.bf16.msra.mxu2 %v3576_v7  ;;  %v1395_v48 = vpop.f32.mrf.mxu0  ;;  %v3856_v7 = vor.u32 %v4667_v0, %v3855_v62  ;;  %v3892_v0 = vor.u32 %v4673_v55, %v3889_v57  ;;  %v3927_v57 = vld [vmem:[#allocation8 + $0xc8] sm:$0xf] }
  0xdf   :  { %1652 = vmatpush.bf16.msra.mxu3 %v3448_v6  ;;  %1640 = vmatpush.bf16.msrb.mxu1 %v3304_v10  ;;  %v1408_v51 = vpop.f32.mrf.mxu1  ;;  %v4663_v10 = vld [vmem:[#allocation8 + $0x2c] sm:$0xf0] }
  0xe0   :  { %1679 = vmatpush.bf16.msra.mxu0 %v3688_v8  ;;  %v1423_v58 = vpop.f32.mrf.mxu2  ;;  %v3840_v14 = vor.u32 %v4663_v10, %v3839_v9  ;;  %v4717_v8 = vld [vmem:[#allocation8 + $0x1e4] sm:$0xf] }
  0xe1   :  { %v4701_v10 = vld [vmem:[#allocation8 + $0x164] sm:$0xf] }
  0xe2   :  { %1641 = vmatmul.bf16.vlgmr.msrb.gmra.mxu1 %v5076_v54  ;;  %1666 = vmatpush.bf16.msra.mxu2 %v3560_v25  ;;  %v3904_v54 = vor.u32 %v4679_v40, %v3903_v38  ;;  %v4691_v25 = vld [vmem:[#allocation8 + $0x10c] sm:$0xf0]  ;;  %v4681_v38 = vld [vmem:[#allocation8 + $0xc4] sm:$0xf]  ;;  %v3921_v40 = vld [vmem:[#allocation8 + $0xd0] sm:$0xf0] }
  0xe3   :  { %1692 = vmatpush.bf16.msra.mxu1 %v3816_v19  ;;  %1653 = vmatpush.bf16.msra.mxu3 %v3432_v24  ;;  %v4685_v19 = vld [vmem:[#allocation8 + $0xe4] sm:$0xf]  ;;  %v3951_v24 = vld [vmem:[#allocation8 + $0x100] sm:$0xf]  ;;  %v3924_v45 = vor.u32 %v4681_v38, %v3921_v40 }
  0xe4   :  { %1680 = vmatmul.bf16.vlgmr.msra.gmra.mxu0 %v5094_v37  ;;  %v3940_v31 = vor.u32 %v4685_v19, %v3937_v23  ;;  %v3952_v34 = vor.u32 %v4691_v25, %v3951_v24  ;;  %v4657_v40 = vld [vmem:[#allocation8 + $0x4] sm:$0xf] }
  0xe5   :  { %1667 = vmatmul.bf16.vlgmr.msra.gmra.mxu2 %v5092_v32  ;;  %v4016_v32 = vor.u32 %v4707_v50, %v4015_v49  ;;  %v3905_v49 = vld [vmem:[#allocation8 + $0xb0] sm:$0xf0] }
  0xe6   :  { %1654 = vmatmul.bf16.vlgmr.msra.gmra.mxu3 %v5080_v63  ;;  %v1370_v63 = vadd.f32 %v5120_v33, %v1357_v44  ;;  %v1397_v5 = vpop.f32.mrf.mxu0  ;;  %v4049_v44 = vld [vmem:[#allocation8 + $0x1d0] sm:$0xf0] }
  0xe7   :  { %2484 = vmatpush.bf16.msrb.mxu3 %v3936_v26  ;;  %2497 = vmatpush.bf16.msrb.mxu1 %v4064_v30  ;;  %v5135_v33 = vpop.f32.mrf.mxu3  ;;  %v1410_v6 = vpop.f32.mrf.mxu1  ;;  %v4192_v26 = vor.u32 %v4751_v21, %v4191_v20  ;;  %v4052_v50 = vor.u32 %v4713_v43, %v4049_v44  ;;  %v4697_v21 = vld [vmem:[#allocation8 + $0x144] sm:$0xf]  ;;  %v4079_v43 = vld [vmem:[#allocation8 + $0x200] sm:$0xf]  ;;  %v4723_v44 = vld [vmem:[#allocation8 + $0x20c] sm:$0xf0] }
  0xe8   :  { %v1383_v37 = vadd.f32 %v5122_v39, %v1370_v63  ;;  %v5139_v17 = vpop.f32.mrf.mxu2  ;;  %v4669_v6 = vld [vmem:[#allocation8 + $0x64] sm:$0xf]  ;;  %v1435_v15 = vadd.f32 %v5135_v33, %v343_v3 }
  0xe9   :  { %2510 = vmatpush.bf16.msrb.mxu2 %v4192_v26  ;;  %v4095_v26 = vld [vmem:[#allocation8 + $0x220] sm:$0xf] }
  0xea   :  { %v1396_v60 = vadd.f32 %v1395_v48, %v1383_v37  ;;  %v4677_v48 = vld [vmem:[#allocation8 + $0xa4] sm:$0xf] }
  0xeb   :  { %2485 = vmatpush.bf16.msrb.mxu3 %v3920_v36  ;;  %2498 = vmatpush.bf16.msrb.mxu1 %v4048_v41  ;;  %v4747_v36 = vld [vmem:[#allocation8 + $0x2cc] sm:$0xf0]  ;;  %v4068_v41 = vor.u32 %v4717_v8, %v4065_v28  ;;  %v3908_v27 = vor.u32 %v4677_v48, %v3905_v49  ;;  %v1448_v28 = vadd.f32 %v5139_v17, %v1435_v15  ;;  %v4688_v49 = vld [vmem:[#allocation8 + $0xf4] sm:$0xf0]  ;;  %v4071_v15 = vld [vmem:[#allocation8 + $0x1e8] sm:$0xf] }
  0xec   :  { %v1409_v39 = vadd.f32 %v1408_v51, %v1396_v60  ;;  %v4176_v42 = vor.u32 %v4747_v36, %v4175_v35  ;;  %v4709_v51 = vld [vmem:[#allocation8 + $0x1a4] sm:$0xf]  ;;  %v4017_v60 = vld [vmem:[#allocation8 + $0x190] sm:$0xf0]  ;;  %v4727_v8 = vld [vmem:[#allocation8 + $0x22c] sm:$0xf0]  ;;  %v4080_v17 = vor.u32 %v4723_v44, %v4079_v43 }
  0xed   :  { %v4693_v35 = vld [vmem:[#allocation8 + $0x124] sm:$0xf]  ;;  %v3969_v36 = vld [vmem:[#allocation8 + $0x130] sm:$0xf0]  ;;  %v4271_v44 = vld [vmem:[#allocation8 + $0x380] sm:$0xf] }
  0xee   :  { %v1422_v56 = vadd.f32 %v1421_v18, %v1409_v39  ;;  %2511 = vmatpush.bf16.msrb.mxu2 %v4176_v42  ;;  %v3825_v42 = vld [vmem:[#allocation8 + $0x10] sm:$0xf0] }
  0xef   :  { %2486 = vmatpush.bf16.msrb.mxu3 %v3904_v54  ;;  %2499 = vmatpush.bf16.msrb.mxu1 %v4032_v47  ;;  %v1436_v22 = vpop.f32.mrf.mxu3  ;;  %v4743_v47 = vld [vmem:[#allocation8 + $0x2ac] sm:$0xf0] }
  0xf0   :  { %v1698_v30 = vmax.f32 %v1422_v56, 0.0  ;;  %v1449_v18 = vpop.f32.mrf.mxu2  ;;  %v4160_v63 = vor.u32 %v4743_v47, %v4159_v46  ;;  %v3857_v56 = vld [vmem:[#allocation8 + $0x50] sm:$0xf0]  ;;  %v4749_v46 = vld [vmem:[#allocation8 + $0x2e4] sm:$0xf] }
  0xf1   :  { %v3985_v22 = vld [vmem:[#allocation8 + $0x150] sm:$0xf0]  ;;  %v3860_v25 = vor.u32 %v4665_v16, %v3857_v56  ;;  %v3943_v18 = vld [vmem:[#allocation8 + $0xe8] sm:$0xf]  ;;  %v4720_v16 = vld [vmem:[#allocation8 + $0x1f4] sm:$0xf0] }
  0xf2   :  { %3820 = vmatmul.msk.bf16.vlgmr.msra.gmra.mxu1 %vm1330_vm0, %v5088_v61  ;;  %v3968_v61 = vor.u32 %v4695_v13, %v3967_v12  ;;  %v5141_v54 = vpack.c.bf16 %v1698_v30, %v1698_v30  ;;  %2512 = vmatpush.bf16.msrb.mxu2 %v4160_v63  ;;  %v4111_v13 = vld [vmem:[#allocation8 + $0x240] sm:$0xf]  ;;  %v3841_v30 = vld [vmem:[#allocation8 + $0x30] sm:$0xf0]  ;;  %v3988_v33 = vor.u32 %v4697_v21, %v3985_v22  ;;  %v4676_v21 = vld [vmem:[#allocation8 + $0x94] sm:$0xf0] }
  0xf3   :  { %2487 = vmatpush.bf16.msrb.mxu3 %v3888_v52  ;;  %2500 = vmatpush.bf16.msrb.mxu1 %v4016_v32  ;;  %v4033_v52 = vld [vmem:[#allocation8 + $0x1b0] sm:$0xf0]  ;;  %v4739_v32 = vld [vmem:[#allocation8 + $0x28c] sm:$0xf0]  ;;  %v3944_v55 = vor.u32 %v4688_v49, %v3943_v18  ;;  %v4737_v22 = vld [vmem:[#allocation8 + $0x284] sm:$0xf] }
  0xf4   :  { %v4036_v37 = vor.u32 %v4709_v51, %v4033_v52  ;;  %v4144_v58 = vor.u32 %v4739_v32, %v4143_v53  ;;  %v4193_v47 = vld [vmem:[#allocation8 + $0x2f0] sm:$0xf0]  ;;  %v4771_v18 = vld [vmem:[#allocation8 + $0x38c] sm:$0xf0]  ;;  %v3863_v49 = vld [vmem:[#allocation8 + $0x48] sm:$0xf] }
  0xf5   :  { %v3953_v63 = vld [vmem:[#allocation8 + $0x110] sm:$0xf0]  ;;  %v4196_v51 = vor.u32 %v4749_v46, %v4193_v47  ;;  %v4272_v46 = vor.u32 %v4771_v18, %v4271_v44  ;;  %v4781_v44 = vld [vmem:[#allocation8 + $0x3e4] sm:$0xf] }
  0xf6   :  { %2513 = vmatpush.bf16.msrb.mxu2 %v4144_v58  ;;  %v4745_v58 = vld [vmem:[#allocation8 + $0x2c4] sm:$0xf]  ;;  %v4321_v18 = vld [vmem:[#allocation8 + $0x3f0] sm:$0xf0] }
  0xf7   :  { %2488 = vmatpush.bf16.msrb.mxu3 %v3872_v59  ;;  %2501 = vmatpush.bf16.msrb.mxu1 %v4000_v1  ;;  %v4705_v59 = vld [vmem:[#allocation8 + $0x184] sm:$0xf]  ;;  %v4127_v1 = vld [vmem:[#allocation8 + $0x260] sm:$0xf] }
  0xf8   :  { %v4020_v39 = vor.u32 %v4705_v59, %v4017_v60  ;;  %v4128_v9 = vor.u32 %v4735_v2, %v4127_v1  ;;  %v4177_v59 = vld [vmem:[#allocation8 + $0x2d0] sm:$0xf0]  ;;  %v4684_v60 = vld [vmem:[#allocation8 + $0xd4] sm:$0xf0]  ;;  %v4783_v1 = vld [vmem:[#allocation8 + $0x3ec] sm:$0xf0] }
  0xfa   :  { %2514 = vmatpush.bf16.msrb.mxu2 %v4128_v9 }
  0xfb   :  { %2489 = vmatpush.bf16.msrb.mxu3 %v3856_v7  ;;  %2502 = vmatpush.bf16.msrb.mxu1 %v3984_v11  ;;  %v3873_v7 = vld [vmem:[#allocation8 + $0x70] sm:$0xf0] }
  0xfc   :  { %v4001_v11 = vld [vmem:[#allocation8 + $0x170] sm:$0xf0]  ;;  %v3876_v12 = vor.u32 %v4669_v6, %v3873_v7  ;;  %v3911_v6 = vld [vmem:[#allocation8 + $0xa8] sm:$0xf]  ;;  %v4741_v7 = vld [vmem:[#allocation8 + $0x2a4] sm:$0xf] }
  0xfd   :  { %v4004_v19 = vor.u32 %v4701_v10, %v4001_v11  ;;  %v4680_v10 = vld [vmem:[#allocation8 + $0xb4] sm:$0xf0] }
  0xfe   :  { %v1460_v62 = vpop.f32.mrf.mxu0 }
  0xff   :  { %2490 = vmatpush.bf16.msrb.mxu3 %v3840_v14  ;;  %2503 = vmatpush.bf16.msrb.mxu1 %v3968_v61  ;;  %v4731_v14 = vld [vmem:[#allocation8 + $0x24c] sm:$0xf0]  ;;  %v1461_v38 = vadd.f32 %v1460_v62, %v1448_v28  ;;  %v4180_v62 = vor.u32 %v4745_v58, %v4177_v59  ;;  %v4055_v28 = vld [vmem:[#allocation8 + $0x1c8] sm:$0xf] }
 0x100   :  { %v4112_v61 = vor.u32 %v4731_v14, %v4111_v13  ;;  %v4779_v13 = vld [vmem:[#allocation8 + $0x3cc] sm:$0xf0]  ;;  %v3847_v59 = vld [vmem:[#allocation8 + $0x28] sm:$0xf] }
 0x101   :  { %v1473_v5 = vpop.f32.mrf.mxu1 }
 0x102   :  { %2515 = vmatpush.bf16.msrb.mxu2 %v4112_v61  ;;  %v1474_v52 = vadd.f32 %v1473_v5, %v1461_v38  ;;  %v3928_v5 = vor.u32 %v4684_v60, %v3927_v57  ;;  %v4708_v57 = vld [vmem:[#allocation8 + $0x194] sm:$0xf0]  ;;  %v4725_v60 = vld [vmem:[#allocation8 + $0x224] sm:$0xf] }
 0x103   :  { %2491 = vmatpush.bf16.msrb.mxu3 %v3824_v29  ;;  %2504 = vmatpush.bf16.msrb.mxu1 %v3952_v34  ;;  %v4661_v29 = vld [vmem:[#allocation8 + $0x24] sm:$0xf]  ;;  %v4096_v34 = vor.u32 %v4727_v8, %v4095_v26  ;;  %v4775_v26 = vld [vmem:[#allocation8 + $0x3ac] sm:$0xf0] }
 0x105   :  { %v1486_v20 = vpop.f32.mrf.mxu3 }
 0x106   :  { %2492 = vmatmul.bf16.vlgmr.msrb.gmra.mxu3 %v5141_v54  ;;  %v1462_v23 = vpop.f32.mrf.mxu0  ;;  %2516 = vmatpush.bf16.msrb.mxu2 %v4096_v34  ;;  %v1487_v32 = vadd.f32 %v1486_v20, %v1474_v52  ;;  %v3912_v20 = vor.u32 %v4680_v10, %v3911_v6  ;;  %v3879_v34 = vld [vmem:[#allocation8 + $0x68] sm:$0xf]  ;;  %v4668_v52 = vld [vmem:[#allocation8 + $0x54] sm:$0xf0]  ;;  %v4239_v6 = vld [vmem:[#allocation8 + $0x340] sm:$0xf] }
 0x107   :  { %2536 = vmatpush.bf16.msra.mxu3 %v3940_v31  ;;  %2549 = vmatpush.bf16.msra.mxu1 %v4068_v41  ;;  %v3844_v41 = vor.u32 %v4661_v29, %v3841_v30  ;;  %v4072_v23 = vor.u32 %v4720_v16, %v4071_v15  ;;  %v4716_v29 = vld [vmem:[#allocation8 + $0x1d4] sm:$0xf0]  ;;  %v3864_v58 = vor.u32 %v4668_v52, %v3863_v49  ;;  %v4721_v16 = vld [vmem:[#allocation8 + $0x204] sm:$0xf]  ;;  %v3913_v52 = vld [vmem:[#allocation8 + $0xb8] sm:$0xf0] }
 0x108   :  { %v1499_v24 = vpop.f32.mrf.mxu2  ;;  %v4660_v15 = vld [vmem:[#allocation8 + $0x14] sm:$0xf0] }
 0x109   :  { %v1475_v31 = vpop.f32.mrf.mxu1  ;;  %v1500_v3 = vadd.f32 %v1499_v24, %v1487_v32  ;;  %v4145_v24 = vld [vmem:[#allocation8 + $0x290] sm:$0xf0]  ;;  %v4767_v32 = vld [vmem:[#allocation8 + $0x36c] sm:$0xf0] }
 0x10a   :  { %2517 = vmatpush.bf16.msrb.mxu2 %v4080_v17  ;;  %v4148_v30 = vor.u32 %v4737_v22, %v4145_v24  ;;  %v4712_v17 = vld [vmem:[#allocation8 + $0x1b4] sm:$0xf0]  ;;  %v4759_v22 = vld [vmem:[#allocation8 + $0x32c] sm:$0xf0]  ;;  %v4686_v24 = vld [vmem:[#allocation8 + $0xec] sm:$0xf] }
 0x10b   :  { %2537 = vmatpush.bf16.msra.mxu3 %v3924_v45  ;;  %2550 = vmatpush.bf16.msra.mxu1 %v4052_v50  ;;  %v3972_v45 = vor.u32 %v4693_v35, %v3969_v36  ;;  %v4689_v50 = vld [vmem:[#allocation8 + $0x104] sm:$0xf]  ;;  %v4129_v36 = vld [vmem:[#allocation8 + $0x270] sm:$0xf0] }
 0x10c   :  { %v4733_v35 = vld [vmem:[#allocation8 + $0x264] sm:$0xf] }
 0x10d   :  { %v1488_v48 = vpop.f32.mrf.mxu3  ;;  %v4132_v43 = vor.u32 %v4733_v35, %v4129_v36 }
 0x10e   :  { %2562 = vmatpush.bf16.msra.mxu2 %v4196_v51 }
 0x10f   :  { %2538 = vmatpush.bf16.msra.mxu3 %v3908_v27  ;;  %2551 = vmatpush.bf16.msra.mxu1 %v4036_v37  ;;  %v3828_v27 = vor.u32 %v4657_v40, %v3825_v42  ;;  %v3956_v37 = vor.u32 %v4689_v50, %v3953_v63  ;;  %v4672_v42 = vld [vmem:[#allocation8 + $0x74] sm:$0xf0]  ;;  %v4729_v50 = vld [vmem:[#allocation8 + $0x244] sm:$0xf]  ;;  %v4113_v63 = vld [vmem:[#allocation8 + $0x250] sm:$0xf0] }
 0x110   :  { %v1501_v53 = vpop.f32.mrf.mxu2  ;;  %v3880_v48 = vor.u32 %v4672_v42, %v3879_v34  ;;  %v4682_v34 = vld [vmem:[#allocation8 + $0xcc] sm:$0xf]  ;;  %v3929_v42 = vld [vmem:[#allocation8 + $0xd8] sm:$0xf0] }
 0x111   :  { %v4255_v53 = vld [vmem:[#allocation8 + $0x360] sm:$0xf]  ;;  %v3932_v49 = vor.u32 %v4682_v34, %v3929_v42  ;;  %v3849_v42 = vld [vmem:[#allocation8 + $0x38] sm:$0xf0] }
 0x112   :  { %2563 = vmatpush.bf16.msra.mxu2 %v4180_v62  ;;  %v4097_v62 = vld [vmem:[#allocation8 + $0x230] sm:$0xf0] }
 0x113   :  { %2539 = vmatpush.bf16.msra.mxu3 %v3892_v0  ;;  %2552 = vmatpush.bf16.msra.mxu1 %v4020_v39  ;;  %v4319_v0 = vld [vmem:[#allocation8 + $0x3e0] sm:$0xf]  ;;  %v4161_v39 = vld [vmem:[#allocation8 + $0x2b0] sm:$0xf0] }
 0x114   :  { %v4320_v2 = vor.u32 %v4783_v1, %v4319_v0  ;;  %v4164_v11 = vor.u32 %v4741_v7, %v4161_v39  ;;  %v4763_v7 = vld [vmem:[#allocation8 + $0x34c] sm:$0xf0]  ;;  %v4007_v39 = vld [vmem:[#allocation8 + $0x168] sm:$0xf] }
 0x115   :  { %v1512_v9 = vpop.f32.mrf.mxu3  ;;  %v4240_v10 = vor.u32 %v4763_v7, %v4239_v6  ;;  %v4714_v7 = vld [vmem:[#allocation8 + $0x1cc] sm:$0xf] }
 0x116   :  { %2523 = vmatpush.bf16.msrb.mxu0 %v4320_v2  ;;  %v1513_v14 = vadd.f32 %v1512_v9, %v1500_v3  ;;  %2564 = vmatpush.bf16.msra.mxu2 %v4164_v11  ;;  %v4664_v3 = vld [vmem:[#allocation8 + $0x34] sm:$0xf0] }
 0x117   :  { %2540 = vmatpush.bf16.msra.mxu3 %v3876_v12  ;;  %2553 = vmatpush.bf16.msra.mxu1 %v4004_v19  ;;  %v4303_v12 = vld [vmem:[#allocation8 + $0x3c0] sm:$0xf]  ;;  %v3895_v19 = vld [vmem:[#allocation8 + $0x88] sm:$0xf]  ;;  %v4704_v9 = vld [vmem:[#allocation8 + $0x174] sm:$0xf0] }
 0x118   :  { %v4304_v56 = vor.u32 %v4779_v13, %v4303_v12  ;;  %v1699_v61 = vmax.f32 %v1513_v14, 0.0  ;;  %v3896_v31 = vor.u32 %v4676_v21, %v3895_v19  ;;  %v3831_v12 = vld [vmem:[#allocation8 + $0x8] sm:$0xf]  ;;  %v3848_v14 = vor.u32 %v4664_v3, %v3847_v59  ;;  %v4223_v21 = vld [vmem:[#allocation8 + $0x320] sm:$0xf] }
 0x119   :  { %v4008_v19 = vor.u32 %v4704_v9, %v4007_v39  ;;  %v4773_v3 = vld [vmem:[#allocation8 + $0x3a4] sm:$0xf] }
 0x11a   :  { %2524 = vmatpush.bf16.msrb.mxu0 %v4304_v56  ;;  %v5148_v8 = vpack.c.bf16 %v1699_v61, %v1699_v61  ;;  %2565 = vmatpush.bf16.msra.mxu2 %v4148_v30  ;;  %v4081_v56 = vld [vmem:[#allocation8 + $0x210] sm:$0xf0]  ;;  %v3991_v61 = vld [vmem:[#allocation8 + $0x148] sm:$0xf]  ;;  %v4696_v30 = vld [vmem:[#allocation8 + $0x134] sm:$0xf0] }
 0x11b   :  { %2541 = vmatpush.bf16.msra.mxu3 %v3860_v25  ;;  %2554 = vmatpush.bf16.msra.mxu1 %v3988_v33  ;;  %v4287_v25 = vld [vmem:[#allocation8 + $0x3a0] sm:$0xf] }
 0x11c   :  { %v4288_v33 = vor.u32 %v4775_v26, %v4287_v25  ;;  %2505 = vmatmul.bf16.vlgmr.msrb.gmra.mxu1 %v5148_v8  ;;  %v3945_v25 = vld [vmem:[#allocation8 + $0xf8] sm:$0xf0]  ;;  %v4224_v26 = vor.u32 %v4759_v22, %v4223_v21  ;;  %v4666_v21 = vld [vmem:[#allocation8 + $0x4c] sm:$0xf] }
 0x11d   :  { %v1514_v38 = vpop.f32.mrf.mxu3 }
 0x11e   :  { %v5151_v40 = vpop.f32.mrf.mxu0  ;;  %2525 = vmatpush.bf16.msrb.mxu0 %v4288_v33  ;;  %2566 = vmatpush.bf16.msra.mxu2 %v4132_v43  ;;  %v4207_v38 = vld [vmem:[#allocation8 + $0x300] sm:$0xf] }
 0x11f   :  { %2542 = vmatpush.bf16.msra.mxu3 %v3844_v41  ;;  %2555 = vmatpush.bf16.msra.mxu1 %v3972_v45  ;;  %v4056_v41 = vor.u32 %v4716_v29, %v4055_v28  ;;  %v4039_v45 = vld [vmem:[#allocation8 + $0x1a8] sm:$0xf]  ;;  %v5153_v47 = vpop.f32.mrf.mxu1  ;;  %v3832_v28 = vor.u32 %v4660_v15, %v3831_v12  ;;  %v4670_v12 = vld [vmem:[#allocation8 + $0x6c] sm:$0xf]  ;;  %v4769_v15 = vld [vmem:[#allocation8 + $0x384] sm:$0xf] }
 0x120   :  { %v4040_v51 = vor.u32 %v4712_v17, %v4039_v45  ;;  %v3975_v29 = vld [vmem:[#allocation8 + $0x128] sm:$0xf]  ;;  %v344_v45 = vperm.slane %v5124_v4, 2 }
 0x122   :  { %2526 = vmatpush.bf16.msrb.mxu0 %v4272_v46  ;;  %v4324_v46 = vor.u32 %v4781_v44, %v4321_v18  ;;  %v4241_v44 = vld [vmem:[#allocation8 + $0x350] sm:$0xf0] }
 0x123   :  { %2543 = vmatpush.bf16.msra.mxu3 %v3828_v27  ;;  %2556 = vmatpush.bf16.msra.mxu1 %v3956_v37  ;;  %v4116_v27 = vor.u32 %v4729_v50, %v4113_v63  ;;  %v4256_v37 = vor.u32 %v4767_v32, %v4255_v53  ;;  %v3959_v50 = vld [vmem:[#allocation8 + $0x108] sm:$0xf]  ;;  %v4692_v63 = vld [vmem:[#allocation8 + $0x114] sm:$0xf0]  ;;  %v4305_v53 = vld [vmem:[#allocation8 + $0x3d0] sm:$0xf0]  ;;  %v1526_v32 = vadd.f32 %v5153_v47, %v344_v45 }
 0x124   :  { %v4057_v47 = vld [vmem:[#allocation8 + $0x1d8] sm:$0xf0]  ;;  %v4702_v45 = vld [vmem:[#allocation8 + $0x16c] sm:$0xf] }
 0x125   :  { %2567 = vmatpush.bf16.msra.mxu2 %v4116_v27  ;;  %v4777_v27 = vld [vmem:[#allocation8 + $0x3c4] sm:$0xf] }
 0x126   :  { %2544 = vmatmul.bf16.vlgmr.msra.gmra.mxu3 %v5141_v54  ;;  %v1553_v1 = vpop.f32.mrf.mxu0  ;;  %2527 = vmatpush.bf16.msrb.mxu0 %v4256_v37  ;;  %v4308_v37 = vor.u32 %v4777_v27, %v4305_v53  ;;  %v3833_v27 = vld [vmem:[#allocation8 + $0x18] sm:$0xf0]  ;;  %v4757_v53 = vld [vmem:[#allocation8 + $0x324] sm:$0xf] }
 0x127   :  { %2588 = vmatpush.bf16.msrb.mxu3 %v3944_v55  ;;  %2601 = vmatpush.bf16.msrb.mxu1 %v4072_v23  ;;  %v4023_v55 = vld [vmem:[#allocation8 + $0x188] sm:$0xf]  ;;  %v1527_v13 = vpop.f32.mrf.mxu1  ;;  %v4700_v23 = vld [vmem:[#allocation8 + $0x154] sm:$0xf0] }
 0x128   :  { %v4024_v2 = vor.u32 %v4708_v57, %v4023_v55  ;;  %v5157_v11 = vpop.f32.mrf.mxu2  ;;  %v3992_v33 = vor.u32 %v4700_v23, %v3991_v61  ;;  %v4718_v55 = vld [vmem:[#allocation8 + $0x1ec] sm:$0xf]  ;;  %v4073_v57 = vld [vmem:[#allocation8 + $0x1f8] sm:$0xf0]  ;;  %v4060_v13 = vor.u32 %v4714_v7, %v4057_v47  ;;  %v4209_v7 = vld [vmem:[#allocation8 + $0x310] sm:$0xf0] }
 0x129   :  { %v5155_v0 = vpop.f32.mrf.mxu3  ;;  %v4076_v1 = vor.u32 %v4718_v55, %v4073_v57  ;;  %v4041_v61 = vld [vmem:[#allocation8 + $0x1b8] sm:$0xf0]  ;;  %v4698_v57 = vld [vmem:[#allocation8 + $0x14c] sm:$0xf] }
 0x12a   :  { %2528 = vmatpush.bf16.msrb.mxu0 %v4240_v10  ;;  %v1539_v6 = vadd.f32 %v5155_v0, %v1526_v32  ;;  %v3865_v23 = vld [vmem:[#allocation8 + $0x58] sm:$0xf0]  ;;  %v4225_v32 = vld [vmem:[#allocation8 + $0x330] sm:$0xf0]  ;;  %v4694_v47 = vld [vmem:[#allocation8 + $0x12c] sm:$0xf] }
 0x12b   :  { %2589 = vmatpush.bf16.msrb.mxu3 %v3928_v5  ;;  %2602 = vmatpush.bf16.msrb.mxu1 %v4056_v41  ;;  %v4100_v5 = vor.u32 %v4725_v60, %v4097_v62  ;;  %v4755_v41 = vld [vmem:[#allocation8 + $0x30c] sm:$0xf0]  ;;  %v4674_v60 = vld [vmem:[#allocation8 + $0x8c] sm:$0xf] }
 0x12c   :  { %2557 = vmatmul.bf16.vlgmr.msra.gmra.mxu1 %v5148_v8  ;;  %v4208_v43 = vor.u32 %v4755_v41, %v4207_v38 }
 0x12d   :  { %2568 = vmatpush.bf16.msra.mxu2 %v4100_v5  ;;  %v4289_v5 = vld [vmem:[#allocation8 + $0x3b0] sm:$0xf0] }
 0x12e   :  { %v5160_v36 = vpop.f32.mrf.mxu0  ;;  %2529 = vmatpush.bf16.msrb.mxu0 %v4224_v26  ;;  %v4292_v39 = vor.u32 %v4773_v3, %v4289_v5 }
 0x12f   :  { %2590 = vmatpush.bf16.msrb.mxu3 %v3912_v20  ;;  %2603 = vmatpush.bf16.msrb.mxu1 %v4040_v51  ;;  %v4084_v20 = vor.u32 %v4721_v16, %v4081_v56  ;;  %v4678_v51 = vld [vmem:[#allocation8 + $0xac] sm:$0xf]  ;;  %v4273_v16 = vld [vmem:[#allocation8 + $0x390] sm:$0xf0]  ;;  %v1552_v56 = vadd.f32 %v5151_v40, %v1539_v6  ;;  %v4753_v6 = vld [vmem:[#allocation8 + $0x304] sm:$0xf] }
 0x130   :  { %v1566_v17 = vpop.f32.mrf.mxu2  ;;  %v3916_v59 = vor.u32 %v4678_v51, %v3913_v52  ;;  %v4276_v0 = vor.u32 %v4769_v15, %v4273_v16  ;;  %v4658_v51 = vld [vmem:[#allocation8 + $0xc] sm:$0xf] }
 0x131   :  { %v1540_v35 = vpop.f32.mrf.mxu3  ;;  %2569 = vmatpush.bf16.msra.mxu2 %v4084_v20  ;;  %v1565_v26 = vadd.f32 %v5157_v11, %v1552_v56  ;;  %v4009_v11 = vld [vmem:[#allocation8 + $0x178] sm:$0xf0]  ;;  %v4690_v16 = vld [vmem:[#allocation8 + $0x10c] sm:$0xf] }
 0x132   :  { %2530 = vmatpush.bf16.msrb.mxu0 %v4208_v43  ;;  %v4662_v35 = vld [vmem:[#allocation8 + $0x2c] sm:$0xf]  ;;  %v4761_v43 = vld [vmem:[#allocation8 + $0x344] sm:$0xf]  ;;  %v4012_v52 = vor.u32 %v4702_v45, %v4009_v11  ;;  %v3961_v56 = vld [vmem:[#allocation8 + $0x118] sm:$0xf0] }
 0x133   :  { %2591 = vmatpush.bf16.msrb.mxu3 %v3896_v31  ;;  %2604 = vmatpush.bf16.msrb.mxu1 %v4024_v2  ;;  %v3948_v31 = vor.u32 %v4686_v24, %v3945_v25  ;;  %v3897_v2 = vld [vmem:[#allocation8 + $0x98] sm:$0xf0]  ;;  %v4765_v24 = vld [vmem:[#allocation8 + $0x364] sm:$0xf]  ;;  %v4257_v25 = vld [vmem:[#allocation8 + $0x370] sm:$0xf0] }
 0x134   :  { %v3900_v10 = vor.u32 %v4674_v60, %v3897_v2  ;;  %v4260_v40 = vor.u32 %v4765_v24, %v4257_v25  ;;  %v4748_v2 = vld [vmem:[#allocation8 + $0x2d4] sm:$0xf0]  ;;  %v4750_v11 = vld [vmem:[#allocation8 + $0x2ec] sm:$0xf] }
 0x135   :  { %v4736_v24 = vld [vmem:[#allocation8 + $0x274] sm:$0xf0] }
 0x136   :  { %2575 = vmatpush.bf16.msra.mxu0 %v4324_v46  ;;  %v1605_v62 = vpop.f32.mrf.mxu0  ;;  %v4244_v46 = vor.u32 %v4761_v43, %v4241_v44 }
 0x137   :  { %2592 = vmatpush.bf16.msrb.mxu3 %v3880_v48  ;;  %2605 = vmatpush.bf16.msrb.mxu1 %v4008_v19  ;;  %v3976_v48 = vor.u32 %v4696_v30, %v3975_v29  ;;  %v4710_v19 = vld [vmem:[#allocation8 + $0x1ac] sm:$0xf]  ;;  %v4025_v29 = vld [vmem:[#allocation8 + $0x198] sm:$0xf0] }
 0x138   :  { %v4044_v22 = vor.u32 %v4710_v19, %v4041_v61  ;;  %v4151_v61 = vld [vmem:[#allocation8 + $0x288] sm:$0xf] }
 0x13a   :  { %2576 = vmatpush.bf16.msra.mxu0 %v4308_v37  ;;  %v3993_v37 = vld [vmem:[#allocation8 + $0x158] sm:$0xf0] }
 0x13b   :  { %2593 = vmatpush.bf16.msrb.mxu3 %v3864_v58  ;;  %2606 = vmatpush.bf16.msrb.mxu1 %v3992_v33  ;;  %v3960_v58 = vor.u32 %v4692_v63, %v3959_v50  ;;  %v4199_v50 = vld [vmem:[#allocation8 + $0x2e8] sm:$0xf]  ;;  %v4752_v63 = vld [vmem:[#allocation8 + $0x2f4] sm:$0xf0]  ;;  %v3996_v3 = vor.u32 %v4698_v57, %v3993_v37 }
 0x13c   :  { %v4200_v60 = vor.u32 %v4752_v63, %v4199_v50  ;;  %v4746_v63 = vld [vmem:[#allocation8 + $0x2cc] sm:$0xf] }
 0x13e   :  { %2577 = vmatpush.bf16.msra.mxu0 %v4292_v39  ;;  %v3977_v39 = vld [vmem:[#allocation8 + $0x138] sm:$0xf0] }
 0x13f   :  { %2594 = vmatpush.bf16.msrb.mxu3 %v3848_v14  ;;  %2607 = vmatpush.bf16.msrb.mxu1 %v3976_v48  ;;  %v1577_v9 = vpop.f32.mrf.mxu1  ;;  %v3881_v14 = vld [vmem:[#allocation8 + $0x78] sm:$0xf0]  ;;  %v3980_v15 = vor.u32 %v4694_v47, %v3977_v39  ;;  %v4295_v39 = vld [vmem:[#allocation8 + $0x3a8] sm:$0xf] }
 0x140   :  { %v3884_v20 = vor.u32 %v4670_v12, %v3881_v14  ;;  %v1578_v33 = vadd.f32 %v1577_v9, %v1565_v26  ;;  %v4744_v14 = vld [vmem:[#allocation8 + $0x2b4] sm:$0xf0]  ;;  %v4153_v47 = vld [vmem:[#allocation8 + $0x298] sm:$0xf0] }
 0x142   :  { %v5169_v30 = vpop.f32.mrf.mxu0  ;;  %2578 = vmatpush.bf16.msra.mxu0 %v4276_v0  ;;  %v4740_v0 = vld [vmem:[#allocation8 + $0x294] sm:$0xf0] }
 0x143   :  { %2595 = vmatpush.bf16.msrb.mxu3 %v3832_v28  ;;  %2608 = vmatpush.bf16.msrb.mxu1 %v3960_v58  ;;  %v4706_v28 = vld [vmem:[#allocation8 + $0x18c] sm:$0xf] }
 0x144   :  { %v4028_v41 = vor.u32 %v4706_v28, %v4025_v29  ;;  %v4119_v29 = vld [vmem:[#allocation8 + $0x248] sm:$0xf] }
 0x146   :  { %2596 = vmatmul.bf16.vlgmr.msrb.gmra.mxu3 %v5141_v54  ;;  %2609 = vmatmul.bf16.vlgmr.msrb.gmra.mxu1 %v5148_v8 }
 0x147   :  { %2640 = vmatpush.bf16.msra.mxu3 %v3948_v31  ;;  %2653 = vmatpush.bf16.msra.mxu1 %v4076_v1  ;;  %v3868_v31 = vor.u32 %v4666_v21, %v3865_v23  ;;  %v1579_v34 = vpop.f32.mrf.mxu1  ;;  %v4183_v1 = vld [vmem:[#allocation8 + $0x2c8] sm:$0xf]  ;;  %v3964_v21 = vor.u32 %v4690_v16, %v3961_v56  ;;  %v4772_v16 = vld [vmem:[#allocation8 + $0x394] sm:$0xf0] }
 0x148   :  { %v1616_v17 = vpop.f32.mrf.mxu2  ;;  %2579 = vmatpush.bf16.msra.mxu0 %v4260_v40  ;;  %v4184_v12 = vor.u32 %v4748_v2, %v4183_v1  ;;  %v4135_v23 = vld [vmem:[#allocation8 + $0x268] sm:$0xf]  ;;  %v4728_v34 = vld [vmem:[#allocation8 + $0x234] sm:$0xf0] }
 0x149   :  { %v1590_v38 = vpop.f32.mrf.mxu3  ;;  %v4136_v28 = vor.u32 %v4736_v24, %v4135_v23  ;;  %v4311_v1 = vld [vmem:[#allocation8 + $0x3c8] sm:$0xf]  ;;  %v4780_v2 = vld [vmem:[#allocation8 + $0x3d4] sm:$0xf0]  ;;  %v4726_v24 = vld [vmem:[#allocation8 + $0x22c] sm:$0xf] }
 0x14a   :  { %v1591_v18 = vadd.f32 %v1590_v38, %v1578_v33  ;;  %v1631_v58 = vpop.f32.mrf.mxu0 }
 0x14b   :  { %2641 = vmatpush.bf16.msra.mxu3 %v3932_v49  ;;  %2654 = vmatpush.bf16.msra.mxu1 %v4060_v13  ;;  %v3852_v49 = vor.u32 %v4662_v35, %v3849_v42  ;;  %v4167_v13 = vld [vmem:[#allocation8 + $0x2a8] sm:$0xf] }
 0x14c   :  { %v1604_v48 = vadd.f32 %v5160_v36, %v1591_v18  ;;  %2580 = vmatpush.bf16.msra.mxu0 %v4244_v46  ;;  %v3836_v36 = vor.u32 %v4658_v51, %v3833_v27  ;;  %v4168_v19 = vor.u32 %v4744_v14, %v4167_v13  ;;  %v4087_v18 = vld [vmem:[#allocation8 + $0x208] sm:$0xf]  ;;  %v4185_v51 = vld [vmem:[#allocation8 + $0x2d8] sm:$0xf0]  ;;  %v4734_v13 = vld [vmem:[#allocation8 + $0x26c] sm:$0xf] }
 0x14d   :  { %v4188_v37 = vor.u32 %v4746_v63, %v4185_v51  ;;  %v4137_v14 = vld [vmem:[#allocation8 + $0x278] sm:$0xf0]  ;;  %v5187_v51 = vld [vmem:[#allocation10] sm:$0xf] }
 0x14e   :  { %v1700_v55 = vmax.f32 %v1604_v48, 0.0  ;;  %v4140_v56 = vor.u32 %v4734_v13, %v4137_v14  ;;  %v4281_v63 = vld [vmem:[#allocation8 + $0x398] sm:$0xf0] }
 0x14f   :  { %2642 = vmatpush.bf16.msra.mxu3 %v3916_v59  ;;  %2655 = vmatpush.bf16.msra.mxu1 %v4044_v22  ;;  %v4228_v59 = vor.u32 %v4757_v53, %v4225_v32  ;;  %v4152_v22 = vor.u32 %v4740_v0, %v4151_v61  ;;  %v4327_v53 = vld [vmem:[#allocation8 + $0x3e8] sm:$0xf]  ;;  %v4784_v32 = vld [vmem:[#allocation8 + $0x3f4] sm:$0xf0]  ;;  %v4730_v61 = vld [vmem:[#allocation8 + $0x24c] sm:$0xf] }
 0x150   :  { %v5172_v62 = vpack.c.bf16 %v1700_v55, %v1700_v55  ;;  %v1618_v9 = vpop.f32.mrf.mxu2  ;;  %v4328_v58 = vor.u32 %v4784_v32, %v4327_v53  ;;  %v4121_v0 = vld [vmem:[#allocation8 + $0x258] sm:$0xf0] }
 0x151   :  { %v1592_v5 = vpop.f32.mrf.mxu3  ;;  %2581 = vmatpush.bf16.msra.mxu0 %v4228_v59  ;;  %v4742_v59 = vld [vmem:[#allocation8 + $0x2ac] sm:$0xf]  ;;  %v4776_v9 = vld [vmem:[#allocation8 + $0x3b4] sm:$0xf0]  ;;  %v4265_v53 = vld [vmem:[#allocation8 + $0x378] sm:$0xf0] }
 0x152   :  { %2518 = vmatmul.bf16.vlgmr.msrb.gmra.mxu2 %v5172_v62 }
 0x153   :  { %2643 = vmatpush.bf16.msra.mxu3 %v3900_v10  ;;  %2656 = vmatpush.bf16.msra.mxu1 %v4028_v41  ;;  %v4212_v10 = vor.u32 %v4753_v6, %v4209_v7  ;;  %v4312_v6 = vor.u32 %v4780_v2, %v4311_v1  ;;  %v4738_v7 = vld [vmem:[#allocation8 + $0x28c] sm:$0xf] }
 0x154   :  { %2614 = vmatpush.bf16.msrb.mxu2 %v4200_v60  ;;  %v4169_v60 = vld [vmem:[#allocation8 + $0x2b8] sm:$0xf0]  ;;  %v4758_v2 = vld [vmem:[#allocation8 + $0x32c] sm:$0xf] }
 0x155   :  { %2582 = vmatpush.bf16.msra.mxu0 %v4212_v10  ;;  %v4156_v10 = vor.u32 %v4738_v7, %v4153_v47  ;;  %v4217_v7 = vld [vmem:[#allocation8 + $0x318] sm:$0xf0] }
 0x157   :  { %2644 = vmatpush.bf16.msra.mxu3 %v3884_v20  ;;  %2657 = vmatpush.bf16.msra.mxu1 %v4012_v52  ;;  %v345_v20 = vperm.slane %v5124_v4, 3 }
 0x158   :  { %2615 = vmatpush.bf16.msrb.mxu2 %v4184_v12  ;;  %v4296_v12 = vor.u32 %v4776_v9, %v4295_v39 }
 0x159   :  { %v1617_v25 = vadd.f32 %v1616_v17, %v345_v20  ;;  %v4201_v17 = vld [vmem:[#allocation8 + $0x2f8] sm:$0xf0]  ;;  %v4263_v20 = vld [vmem:[#allocation8 + $0x368] sm:$0xf] }
 0x15b   :  { %2645 = vmatpush.bf16.msra.mxu3 %v3868_v31  ;;  %2658 = vmatpush.bf16.msra.mxu1 %v3996_v3  ;;  %v1630_v40 = vadd.f32 %v5169_v30, %v1617_v25  ;;  %v4103_v31 = vld [vmem:[#allocation8 + $0x228] sm:$0xf]  ;;  %v4172_v3 = vor.u32 %v4742_v59, %v4169_v60  ;;  %v4105_v25 = vld [vmem:[#allocation8 + $0x238] sm:$0xf0] }
 0x15c   :  { %2616 = vmatpush.bf16.msrb.mxu2 %v4168_v19  ;;  %v4104_v44 = vor.u32 %v4728_v34, %v4103_v31  ;;  %v4231_v31 = vld [vmem:[#allocation8 + $0x328] sm:$0xf]  ;;  %v4760_v34 = vld [vmem:[#allocation8 + $0x334] sm:$0xf0] }
 0x15f   :  { %2646 = vmatpush.bf16.msra.mxu3 %v3852_v49  ;;  %2659 = vmatpush.bf16.msra.mxu1 %v3980_v15  ;;  %v1642_v26 = vpop.f32.mrf.mxu1  ;;  %v4204_v49 = vor.u32 %v4750_v11, %v4201_v17  ;;  %v4279_v15 = vld [vmem:[#allocation8 + $0x388] sm:$0xf]  ;;  %v4778_v11 = vld [vmem:[#allocation8 + $0x3cc] sm:$0xf]  ;;  %v4313_v17 = vld [vmem:[#allocation8 + $0x3d8] sm:$0xf0] }
 0x160   :  { %2617 = vmatpush.bf16.msrb.mxu2 %v4152_v22  ;;  %v1643_v35 = vadd.f32 %v1642_v26, %v1630_v40  ;;  %v4280_v19 = vor.u32 %v4772_v16, %v4279_v15  ;;  %v4124_v22 = vor.u32 %v4730_v61, %v4121_v0  ;;  %v4247_v26 = vld [vmem:[#allocation8 + $0x348] sm:$0xf]  ;;  %v4792_v15 = vld [vmem:[#allocation11 + $0x38] sm:$0xff] }
 0x161   :  { %v1681_v4 = vpop.f32.mrf.mxu0 }
 0x162   :  { %2570 = vmatmul.bf16.vlgmr.msra.gmra.mxu2 %v5172_v62 }
 0x163   :  { %2647 = vmatpush.bf16.msra.mxu3 %v3836_v36  ;;  %2660 = vmatpush.bf16.msra.mxu1 %v3964_v21  ;;  %v4768_v21 = vld [vmem:[#allocation8 + $0x374] sm:$0xf0] }
 0x164   :  { %2618 = vmatpush.bf16.msrb.mxu2 %v4136_v28  ;;  %v4264_v23 = vor.u32 %v4768_v21, %v4263_v20  ;;  %v4764_v28 = vld [vmem:[#allocation8 + $0x354] sm:$0xf0]  ;;  %v4790_v20 = vld [vmem:[#allocation11 + $0x28] sm:$0xff] }
 0x165   :  { %v4248_v40 = vor.u32 %v4764_v28, %v4247_v26  ;;  %v4800_v26 = vld [vmem:[#allocation11 + $0x78] sm:$0xff]  ;;  %v4787_v28 = vld [vmem:[#allocation11 + $0x10] sm:$0xff] }
 0x166   :  { %2648 = vmatmul.bf16.vlgmr.msra.gmra.mxu3 %v5141_v54  ;;  %2661 = vmatmul.bf16.vlgmr.msra.gmra.mxu1 %v5148_v8  ;;  %v4732_v54 = vld [vmem:[#allocation8 + $0x254] sm:$0xf0] }
 0x167   :  { %v4120_v33 = vor.u32 %v4732_v54, %v4119_v29  ;;  %v1644_v38 = vpop.f32.mrf.mxu1  ;;  %v4724_v8 = vld [vmem:[#allocation8 + $0x214] sm:$0xf0]  ;;  %v4108_v54 = vor.u32 %v4726_v24, %v4105_v25  ;;  %2960 = vmatpush.bf16.msrb.mxu3 %v4792_v15  ;;  %v4788_v25 = vld [vmem:[#allocation11 + $0x18] sm:$0xff]  ;;  %2973 = vmatpush.bf16.msrb.mxu1 %v4800_v26  ;;  %v4810_v15 = vld [vmem:[#allocation11 + $0xc8] sm:$0xff] }
 0x168   :  { %v1668_v43 = vpop.f32.mrf.mxu2  ;;  %v4088_v48 = vor.u32 %v4724_v8, %v4087_v18  ;;  %v4232_v38 = vor.u32 %v4760_v34, %v4231_v31  ;;  %v4329_v18 = vld [vmem:[#allocation8 + $0x3f8] sm:$0xf0]  ;;  %v1839_v34 = vperm.slane %v5187_v51, 3 }
 0x169   :  { %v1655_v41 = vpop.f32.mrf.mxu3  ;;  %2619 = vmatpush.bf16.msrb.mxu2 %v4120_v33  ;;  %v1683_v30 = vpop.f32.mrf.mxu0  ;;  %v4089_v33 = vld [vmem:[#allocation8 + $0x218] sm:$0xf0] }
 0x16a   :  { %v1656_v42 = vadd.f32 %v1655_v41, %v1643_v35  ;;  %v4215_v41 = vld [vmem:[#allocation8 + $0x308] sm:$0xf]  ;;  %v4316_v30 = vor.u32 %v4778_v11, %v4313_v17  ;;  %v4794_v11 = vld [vmem:[#allocation11 + $0x48] sm:$0xff] }
 0x16b   :  { %v4806_v17 = vld [vmem:[#allocation11 + $0xa8] sm:$0xff] }
 0x16c   :  { %v1669_v45 = vadd.f32 %v1668_v43, %v1656_v42  ;;  %v4756_v42 = vld [vmem:[#allocation8 + $0x314] sm:$0xf0] }
 0x16d   :  { %2620 = vmatpush.bf16.msrb.mxu2 %v4104_v44  ;;  %v4782_v44 = vld [vmem:[#allocation8 + $0x3ec] sm:$0xf]  ;;  %v4216_v8 = vor.u32 %v4756_v42, %v4215_v41 }
 0x16e   :  { %v1682_v46 = vadd.f32 %v1681_v4, %v1669_v45  ;;  %v4722_v4 = vld [vmem:[#allocation8 + $0x20c] sm:$0xf]  ;;  %v4332_v45 = vor.u32 %v4782_v44, %v4329_v18  ;;  %v4807_v44 = vld [vmem:[#allocation11 + $0xb0] sm:$0xff] }
 0x16f   :  { %v1694_v50 = vpop.f32.mrf.mxu1  ;;  %v4092_v35 = vor.u32 %v4722_v4, %v4089_v33  ;;  %v4785_v4 = vld [vmem:[#allocation11] sm:$0xff] }
 0x170   :  { %v1695_v52 = vadd.f32 %v1694_v50, %v1682_v46  ;;  %v1670_v55 = vpop.f32.mrf.mxu2  ;;  %v4774_v46 = vld [vmem:[#allocation8 + $0x3ac] sm:$0xf]  ;;  %v4797_v33 = vld [vmem:[#allocation11 + $0x60] sm:$0xff] }
 0x171   :  { %v1657_v27 = vpop.f32.mrf.mxu3  ;;  %2621 = vmatpush.bf16.msrb.mxu2 %v4088_v48  ;;  %v4297_v48 = vld [vmem:[#allocation8 + $0x3b8] sm:$0xf0]  ;;  %v4770_v50 = vld [vmem:[#allocation8 + $0x38c] sm:$0xf] }
 0x172   :  { %v1701_v57 = vmax.f32 %v1695_v52, 0.0  ;;  %v4284_v52 = vor.u32 %v4770_v50, %v4281_v63  ;;  %v1836_v27 = vperm.slane %v5187_v51, 0  ;;  %v4804_v63 = vld [vmem:[#allocation11 + $0x98] sm:$0xff] }
 0x174   :  { %v5180_v36 = vpack.c.bf16 %v1701_v57, %v1701_v57  ;;  %2622 = vmatmul.bf16.vlgmr.msrb.gmra.mxu2 %v5172_v62  ;;  %v4762_v57 = vld [vmem:[#allocation8 + $0x34c] sm:$0xf] }
 0x175   :  { %2666 = vmatpush.bf16.msra.mxu2 %v4204_v49  ;;  %v4300_v49 = vor.u32 %v4774_v46, %v4297_v48  ;;  %v4793_v46 = vld [vmem:[#allocation11 + $0x40] sm:$0xff] }
 0x176   :  { %2531 = vmatmul.bf16.vlgmr.msrb.gmra.mxu0 %v5180_v36  ;;  %v4805_v48 = vld [vmem:[#allocation11 + $0xa0] sm:$0xff] }
 0x177   :  { %2627 = vmatpush.bf16.msrb.mxu0 %v4328_v58  ;;  %v1696_v5 = vpop.f32.mrf.mxu1 }
 0x179   :  { %2667 = vmatpush.bf16.msra.mxu2 %v4188_v37  ;;  %v4249_v37 = vld [vmem:[#allocation8 + $0x358] sm:$0xf0] }
 0x17a   :  { %v4252_v1 = vor.u32 %v4762_v57, %v4249_v37  ;;  %v4801_v57 = vld [vmem:[#allocation11 + $0x80] sm:$0xff]  ;;  %v4816_v37 = vld [vmem:[#allocation11 + $0xf8] sm:$0xff] }
 0x17b   :  { %2628 = vmatpush.bf16.msrb.mxu0 %v4312_v6  ;;  %v4754_v6 = vld [vmem:[#allocation8 + $0x30c] sm:$0xf] }
 0x17c   :  { %v4220_v9 = vor.u32 %v4754_v6, %v4217_v7  ;;  %v4813_v6 = vld [vmem:[#allocation11 + $0xe0] sm:$0xff] }
 0x17d   :  { %2668 = vmatpush.bf16.msra.mxu2 %v4172_v3  ;;  %v4233_v3 = vld [vmem:[#allocation8 + $0x338] sm:$0xf0] }
 0x17e   :  { %v4236_v5 = vor.u32 %v4758_v2, %v4233_v3  ;;  %v4814_v3 = vld [vmem:[#allocation11 + $0xe8] sm:$0xff] }
 0x17f   :  { %2629 = vmatpush.bf16.msrb.mxu0 %v4296_v12 }
 0x181   :  { %2669 = vmatpush.bf16.msra.mxu2 %v4156_v10  ;;  %v1837_v10 = vperm.slane %v5187_v51, 1 }
 0x183   :  { %2630 = vmatpush.bf16.msrb.mxu0 %v4280_v19  ;;  %v4791_v19 = vld [vmem:[#allocation11 + $0x30] sm:$0xff] }
 0x184   :  { %2961 = vmatpush.bf16.msrb.mxu3 %v4791_v19 }
 0x185   :  { %2670 = vmatpush.bf16.msra.mxu2 %v4140_v56  ;;  %v1838_v56 = vperm.slane %v5187_v51, 2  ;;  %v4803_v51 = vld [vmem:[#allocation11 + $0x90] sm:$0xff] }
 0x186   :  { %2583 = vmatmul.bf16.vlgmr.msra.gmra.mxu0 %v5180_v36 }
 0x187   :  { %2631 = vmatpush.bf16.msrb.mxu0 %v4264_v23  ;;  %v4789_v23 = vld [vmem:[#allocation11 + $0x20] sm:$0xff] }
 0x188   :  { %2962 = vmatpush.bf16.msrb.mxu3 %v4790_v20 }
 0x189   :  { %v2493_v29 = vpop.f32.mrf.mxu3  ;;  %2671 = vmatpush.bf16.msra.mxu2 %v4124_v22 }
 0x18a   :  { %v2494_v55 = vadd.f32 %v2493_v29, %v1836_v27  ;;  %v4799_v29 = vld [vmem:[#allocation11 + $0x70] sm:$0xff] }
 0x18b   :  { %2632 = vmatpush.bf16.msrb.mxu0 %v4248_v40  ;;  %2974 = vmatpush.bf16.msrb.mxu1 %v4799_v29  ;;  %v4798_v40 = vld [vmem:[#allocation11 + $0x68] sm:$0xff] }
 0x18c   :  { %2963 = vmatpush.bf16.msrb.mxu3 %v4789_v23 }
 0x18d   :  { %2672 = vmatpush.bf16.msra.mxu2 %v4108_v54  ;;  %v4786_v54 = vld [vmem:[#allocation11 + $0x8] sm:$0xff] }
 0x18f   :  { %2633 = vmatpush.bf16.msrb.mxu0 %v4232_v38  ;;  %2975 = vmatpush.bf16.msrb.mxu1 %v4798_v40  ;;  %v4808_v38 = vld [vmem:[#allocation11 + $0xb8] sm:$0xff] }
 0x190   :  { %2964 = vmatpush.bf16.msrb.mxu3 %v4788_v25 }
 0x191   :  { %v2495_v43 = vpop.f32.mrf.mxu3  ;;  %2673 = vmatpush.bf16.msra.mxu2 %v4092_v35  ;;  %v4796_v35 = vld [vmem:[#allocation11 + $0x58] sm:$0xff] }
 0x192   :  { %v4795_v43 = vld [vmem:[#allocation11 + $0x50] sm:$0xff] }
 0x193   :  { %2634 = vmatpush.bf16.msrb.mxu0 %v4216_v8  ;;  %2976 = vmatpush.bf16.msrb.mxu1 %v4797_v33 }
 0x194   :  { %2674 = vmatmul.bf16.vlgmr.msra.gmra.mxu2 %v5172_v62  ;;  %v4766_v62 = vld [vmem:[#allocation8 + $0x36c] sm:$0xf]  ;;  %2965 = vmatpush.bf16.msrb.mxu3 %v4787_v28 }
 0x195   :  { %v4268_v32 = vor.u32 %v4766_v62, %v4265_v53  ;;  %2986 = vmatpush.bf16.msrb.mxu2 %v4808_v38  ;;  %v4802_v62 = vld [vmem:[#allocation11 + $0x88] sm:$0xff] }
 0x196   :  { %2635 = vmatmul.bf16.vlgmr.msrb.gmra.mxu0 %v5180_v36 }
 0x197   :  { %2679 = vmatpush.bf16.msra.mxu0 %v4332_v45  ;;  %2977 = vmatpush.bf16.msrb.mxu1 %v4796_v35 }
 0x198   :  { %2966 = vmatpush.bf16.msrb.mxu3 %v4786_v54 }
 0x199   :  { %v2506_v58 = vpop.f32.mrf.mxu1  ;;  %2987 = vmatpush.bf16.msrb.mxu2 %v4807_v44 }
 0x19a   :  { %v5190_v60 = vadd.f32 %v2506_v58, %v2494_v55 }
 0x19b   :  { %2680 = vmatpush.bf16.msra.mxu0 %v4316_v30  ;;  %2978 = vmatpush.bf16.msrb.mxu1 %v4795_v43 }
 0x19c   :  { %2967 = vmatpush.bf16.msrb.mxu3 %v4785_v4 }
 0x19d   :  { %2988 = vmatpush.bf16.msrb.mxu2 %v4806_v17 }
 0x19f   :  { %2681 = vmatpush.bf16.msra.mxu0 %v4300_v49  ;;  %2979 = vmatpush.bf16.msrb.mxu1 %v4794_v11 }
 0x1a1   :  { %v2508_v47 = vpop.f32.mrf.mxu1  ;;  %2989 = vmatpush.bf16.msrb.mxu2 %v4805_v48 }
 0x1a3   :  { %2682 = vmatpush.bf16.msra.mxu0 %v4284_v52  ;;  %2980 = vmatpush.bf16.msrb.mxu1 %v4793_v46 }
 0x1a5   :  { %2990 = vmatpush.bf16.msrb.mxu2 %v4804_v63 }
 0x1a7   :  { %2683 = vmatpush.bf16.msra.mxu0 %v4268_v32 }
 0x1a9   :  { %v2545_v59 = vpop.f32.mrf.mxu3  ;;  %v2558_v13 = vpop.f32.mrf.mxu1  ;;  %2991 = vmatpush.bf16.msrb.mxu2 %v4803_v51 }
 0x1aa   :  { %v2546_v12 = vadd.f32 %v2545_v59, %v1837_v10 }
 0x1ab   :  { %2684 = vmatpush.bf16.msra.mxu0 %v4252_v1  ;;  %v4815_v1 = vld [vmem:[#allocation11 + $0xf0] sm:$0xff] }
 0x1ac   :  { %v5193_v14 = vadd.f32 %v2558_v13, %v2546_v12  ;;  %v4811_v12 = vld [vmem:[#allocation11 + $0xd0] sm:$0xff] }
 0x1ad   :  { %2992 = vmatpush.bf16.msrb.mxu2 %v4802_v62 }
 0x1af   :  { %2685 = vmatpush.bf16.msra.mxu0 %v4236_v5 }
 0x1b1   :  { %v2547_v39 = vpop.f32.mrf.mxu3  ;;  %v2560_v16 = vpop.f32.mrf.mxu1  ;;  %2993 = vmatpush.bf16.msrb.mxu2 %v4801_v57 }
 0x1b2   :  { %v4812_v39 = vld [vmem:[#allocation11 + $0xd8] sm:$0xff] }
 0x1b3   :  { %2686 = vmatpush.bf16.msra.mxu0 %v4220_v9 }
 0x1b6   :  { %2687 = vmatmul.bf16.vlgmr.msra.gmra.mxu0 %v5180_v36 }
 0x1b7   :  { %2999 = vmatpush.bf16.msrb.mxu0 %v4816_v37 }
 0x1bb   :  { %3000 = vmatpush.bf16.msrb.mxu0 %v4815_v1 }
 0x1bf   :  { %3001 = vmatpush.bf16.msrb.mxu0 %v4814_v3 }
 0x1c3   :  { %v2610_v21 = vpop.f32.mrf.mxu1  ;;  %3002 = vmatpush.bf16.msrb.mxu0 %v4813_v6 }
 0x1c7   :  { %3003 = vmatpush.bf16.msrb.mxu0 %v4812_v39 }
 0x1c9   :  { %v2597_v61 = vpop.f32.mrf.mxu3 }
 0x1ca   :  { %v2598_v0 = vadd.f32 %v2597_v61, %v1838_v56  ;;  %v4809_v56 = vld [vmem:[#allocation11 + $0xc0] sm:$0xff] }
 0x1cb   :  { %v2612_v36 = vpop.f32.mrf.mxu1  ;;  %3004 = vmatpush.bf16.msrb.mxu0 %v4811_v12 }
 0x1cc   :  { %v5197_v22 = vadd.f32 %v2610_v21, %v2598_v0 }
 0x1cf   :  { %3005 = vmatpush.bf16.msrb.mxu0 %v4810_v15 }
 0x1d1   :  { %v2599_v24 = vpop.f32.mrf.mxu3 }
 0x1d3   :  { %3006 = vmatpush.bf16.msrb.mxu0 %v4809_v56 }
 0x1d5   :  { %v2519_v31 = vpop.f32.mrf.mxu2 }
 0x1d6   :  { %v2520_v27 = vadd.f32 %v2519_v31, %v5190_v60 }
 0x1dd   :  { %v2521_v8 = vpop.f32.mrf.mxu2 }
 0x1e3   :  { %v2662_v18 = vpop.f32.mrf.mxu1 }
 0x1e5   :  { %v2571_v50 = vpop.f32.mrf.mxu2 }
 0x1e6   :  { %v2572_v60 = vadd.f32 %v2571_v50, %v5193_v14 }
 0x1e9   :  { %v2649_v41 = vpop.f32.mrf.mxu3 }
 0x1ea   :  { %v2650_v42 = vadd.f32 %v2649_v41, %v1839_v34  ;;  %v4828_v34 = vld [vmem:[%s5218_s6] ss:$0 sm:$0xff] }
 0x1eb   :  { %v2664_v49 = vpop.f32.mrf.mxu1 }
 0x1ec   :  { %v5200_v45 = vadd.f32 %v2662_v18, %v2650_v42 }
 0x1ed   :  { %v2573_v52 = vpop.f32.mrf.mxu2 }
 0x1f1   :  { %v2651_v30 = vpop.f32.mrf.mxu3 }
 0x1f3   :  { %v2532_v53 = vpop.f32.mrf.mxu0 }
 0x1f4   :  { %v2533_v32 = vadd.f32 %v2532_v53, %v2520_v27 }
 0x1f6   :  { %v2692_v55 = vmax.f32 %v2533_v32, 0.0 }
 0x1f7   :  { %v2623_v58 = vpop.f32.mrf.mxu2 }
 0x1f8   :  { %v2696_v59 = vpack.c.bf16 %v2692_v55, %v2692_v55  ;;  %v2624_v16 = vadd.f32 %v2623_v58, %v5197_v22 }
 0x1fa   :  { %2968 = vmatmul.bf16.vlgmr.msrb.gmra.mxu3 %v2696_v59 }
 0x1fb   :  { %v2534_v2 = vpop.f32.mrf.mxu0 }
 0x1ff   :  { %v2625_v5 = vpop.f32.mrf.mxu2 }
 0x203   :  { %v2584_v7 = vpop.f32.mrf.mxu0 }
 0x204   :  { %v2585_v47 = vadd.f32 %v2584_v7, %v2572_v60 }
 0x206   :  { %v2693_v9 = vmax.f32 %v2585_v47, 0.0 }
 0x208   :  { %v2697_v10 = vpack.c.bf16 %v2693_v9, %v2693_v9 }
 0x20a   :  { %2981 = vmatmul.bf16.vlgmr.msrb.gmra.mxu1 %v2697_v10 }
 0x20b   :  { %v2586_v13 = vpop.f32.mrf.mxu0 }
 0x213   :  { %v2636_v19 = vpop.f32.mrf.mxu0 }
 0x214   :  { %v2637_v61 = vadd.f32 %v2636_v19, %v2624_v16 }
 0x216   :  { %v2694_v14 = vmax.f32 %v2637_v61, 0.0 }
 0x217   :  { %v2675_v0 = vpop.f32.mrf.mxu2 }
 0x218   :  { %v2698_v20 = vpack.c.bf16 %v2694_v14, %v2694_v14  ;;  %v2676_v24 = vadd.f32 %v2675_v0, %v5200_v45 }
 0x21a   :  { %2994 = vmatmul.bf16.vlgmr.msrb.gmra.mxu2 %v2698_v20 }
 0x21b   :  { %v2638_v21 = vpop.f32.mrf.mxu0 }
 0x21f   :  { %v2677_v23 = vpop.f32.mrf.mxu2 }
 0x233   :  { %v2688_v25 = vpop.f32.mrf.mxu0 }
 0x234   :  { %v2689_v26 = vadd.f32 %v2688_v25, %v2676_v24 }
 0x236   :  { %v2695_v36 = vmax.f32 %v2689_v26, 0.0 }
 0x238   :  { %v2699_v28 = vpack.c.bf16 %v2695_v36, %v2695_v36 }
 0x23a   :  { %3007 = vmatmul.bf16.vlgmr.msrb.gmra.mxu0 %v2699_v28 }
 0x23b   :  { %v2690_v29 = vpop.f32.mrf.mxu0 }
 0x27d   :  { %v2969_v54 = vpop.f32.mrf.mxu3 }
 0x27e   :  { %v2970_v35 = vadd.f32 %v4828_v34, %v2969_v54 }
 0x285   :  { %v2971_v22 = vpop.f32.mrf.mxu3 }
 0x287   :  { %v2982_v40 = vpop.f32.mrf.mxu1 }
 0x288   :  { %v2983_v38 = vadd.f32 %v2982_v40, %v2970_v35 }
 0x28f   :  { %v2984_v4 = vpop.f32.mrf.mxu1 }
 0x29d   :  { %v2995_v33 = vpop.f32.mrf.mxu2 }
 0x29e   :  { %v2996_v41 = vadd.f32 %v2995_v33, %v2983_v38 }
 0x2a5   :  { %v2997_v31 = vpop.f32.mrf.mxu2 }
 0x2b7   :  { %v3008_v42 = vpop.f32.mrf.mxu0 }
 0x2b8   :  { %v3009_v43 = vadd.f32 %v3008_v42, %v2996_v41 }
 0x2ba   :  { %3012 = vst [vmem:[#allocation13] sm:$0x3] %v3009_v43 }
 0x2bb   :  { %3023 = dma.vmem_to_hbm [thread:$0]  %s3019_s9, 32, %s3021_s12, [#allocation4]  }
 0x2bf   :  { %v3010_v44 = vpop.f32.mrf.mxu0 }
 0x2c0   :  { %5005 = dma.done.wait [#allocation4], 32  }
 0x2c1   :  { %5006 = vsyncadd [#allocation4], 4294967264 }
 0x2c2   :  { %3028 = vsyncpa [#allocation3], 1 }
 0x2c3   :  { %3029 = vsyncpa [#allocation6], 1 }
 0x2c4   :  { %3030 = vsyncpa [#allocation9], 1 }
 0x2c5   :  { %3031 = vsyncpa [#allocation12], 1 }
 0x2c6   :  { %3032 = vsyncpa [#allocation4], 1 }

</bundles_post_ra>
